<compile_context>
chip_gen: v5e
topology: v5e:2x2
jax: 0.10.0
libtpu: 0.0.40
codegen_flags: <defaults>
</compile_context>

<pallas_src>
import math
import functools

import jax
import jax.numpy as jnp
from jax.experimental import pallas as pl
from jax.experimental.pallas import tpu as pltpu


# ----------------------------- in-kernel helpers -----------------------------

def _layer_norm(x, gamma, beta, eps=1e-5):
    mu = jnp.mean(x, axis=-1, keepdims=True)
    xc = x - mu
    var = jnp.mean(xc * xc, axis=-1, keepdims=True)
    return xc * jax.lax.rsqrt(var + eps) * gamma + beta


def _new_gelu(x):
    c = math.sqrt(2.0 / math.pi)
    return 0.5 * x * (1.0 + jnp.tanh(c * (x + 0.044715 * x * x * x)))


# --------------------------------- kernel ------------------------------------

def bert_block_kernel(n_heads,
                      x_ref, mask_ref,
                      wq_ref, bq_ref, wk_ref, bk_ref, wv_ref, bv_ref,
                      wo_ref, bo_ref, g1_ref, be1_ref,
                      w1_ref, b1_ref, w2_ref, b2_ref, g2_ref, be2_ref,
                      o_ref,
                      ks_ref, vs_ref):
    f32 = jnp.float32
    bf16 = jnp.bfloat16

    H = n_heads
    T = x_ref.shape[1]
    C = x_ref.shape[2]
    D = C // H
    TQ = o_ref.shape[1]
    qi = pl.program_id(1)

    # ---- K/V projection + head split: once per batch element (qi == 0) ----
    @pl.when(qi == 0)
    def _():
        xkv = x_ref[0]                                     # (T, C) bf16
        xb = jnp.broadcast_to(xkv, (H, T, C))              # batched lhs
        k3 = jnp.einsum('htc,hcd->htd', xb, wk_ref[...],
                        preferred_element_type=f32) + bk_ref[...]
        v3 = jnp.einsum('htc,hcd->htd', xb, wv_ref[...],
                        preferred_element_type=f32) + bv_ref[...]
        ks_ref[...] = k3.astype(bf16)                      # persistent scratch
        vs_ref[...] = v3.astype(bf16)

    # ---- query tile: sliced from the resident full-sequence block ----
    start = pl.multiple_of(qi * TQ, TQ)
    xq_bf = x_ref[0, pl.ds(start, TQ), :]                  # (TQ, C) bf16
    xq = xq_bf.astype(f32)                                 # residual path (f32)

    xqb = jnp.broadcast_to(xq_bf, (H, TQ, C))
    # 1/sqrt(D) is pre-folded into wq/bq on the host.
    q3 = jnp.einsum('hqc,hcd->hqd', xqb, wq_ref[...],
                    preferred_element_type=f32) + bq_ref[...]   # (H, TQ, D) f32

    # ---- attention, batched over heads ----
    # TODO(synk): PyTorch's `attn - inf*(1-mask)` yields NaN for kept keys; we
    # implement the intended additive masking with a large negative value.
    neg = 1e30 * (1.0 - mask_ref[...])                     # (1, 1, T), hoisted
    scores = jnp.einsum('hqd,hkd->hqk', q3.astype(bf16), ks_ref[...],
                        preferred_element_type=f32) - neg  # (H, TQ, T) f32
    m = jnp.max(scores, axis=-1, keepdims=True)
    p = jnp.exp(scores - m)
    l = jnp.sum(p, axis=-1, keepdims=True)
    y3 = jnp.einsum('hqk,hkd->hqd', p.astype(bf16), vs_ref[...],
                    preferred_element_type=f32)            # (H, TQ, D) f32
    # deferred softmax normalization: scale the (H, TQ, D) output, not p
    y3 = y3 * pl.reciprocal(l, approx=True)

    # ---- head merge fused into output projection ----
    att = jnp.einsum('hqd,hdc->hqc', y3.astype(bf16), wo_ref[...],
                     preferred_element_type=f32)           # (H, TQ, C)
    att = jnp.sum(att, axis=0) + bo_ref[...]               # (TQ, C)

    # ---- residual + LayerNorm 1 (dropout = identity) ----
    h1 = _layer_norm(xq + att, g1_ref[...], be1_ref[...])

    # ---- position-wise FFN (fc1 -> NewGELU -> fc2) + residual + LayerNorm 2 ----
    f = jnp.dot(h1.astype(bf16), w1_ref[...], preferred_element_type=f32) + b1_ref[...]
    f = _new_gelu(f)
    f = jnp.dot(f.astype(bf16), w2_ref[...], preferred_element_type=f32) + b2_ref[...]
    out = _layer_norm(h1 + f, g2_ref[...], be2_ref[...])

    o_ref[0] = out.astype(o_ref.dtype)


# -------------------------------- wrapper -------------------------------------

def _pick_q_tile(T, H, score_budget_bytes=12 << 20):
    # Largest tile dividing T whose (scores + p) f32 temporaries stay within a
    # budget that also fits a 64 MiB-VMEM part (v7x) alongside weights/scratch.
    for cand in (256, 128, 64, 32, 16, 8):
        if T % cand == 0 and 2 * H * cand * T * 4 <= score_budget_bytes:
            return cand
    for cand in (256, 128, 64, 32, 16, 8):
        if T % cand == 0:
            return cand
    return T


@functools.lru_cache(maxsize=1)
def _supports_single_buffered_weights():
    """Feature-probe pl.Buffered(1) with a tiny standalone pallas_call.

    Any failure here only disables single-buffering of the weight blocks; it
    never masks errors from the real kernel.
    """
    try:
        def probe_kernel(w_ref, o_ref):
            o_ref[...] = w_ref[...] * 2.0

        probe = pl.pallas_call(
            probe_kernel,
            out_shape=jax.ShapeDtypeStruct((16, 128), jnp.float32),
            grid=(2,),
            in_specs=[pl.BlockSpec((8, 128), lambda i: (0, 0),
                                   pipeline_mode=pl.Buffered(1))],
            out_specs=pl.BlockSpec((8, 128), lambda i: (i, 0)),
        )
        jax.block_until_ready(probe(jnp.ones((8, 128), jnp.float32)))
        return True
    except Exception:
        return False


def bert_block(x, mask, params, n_heads, q_tile=None):
    B, T, C = x.shape
    H = n_heads
    assert C % H == 0
    D = C // H
    F = params["w1"].shape[1]
    TQ = q_tile if q_tile is not None else _pick_q_tile(T, H)
    assert T % TQ == 0
    nq = T // TQ
    scale = 1.0 / math.sqrt(D)

    f32, bf16 = jnp.float32, jnp.bfloat16

    # Host-side weight re-layout (free): per-head projection weights (H, C, D),
    # output projection with the head merge folded in (H, D, C).
    def heads_w(w):                     # (C, C) -> (H, C, D)
        return jnp.transpose(w.reshape(C, H, D), (1, 0, 2))

    def heads_b(b):                     # (1, C) -> (H, 1, D)
        return b.reshape(H, D)[:, None, :]

    wq3 = (heads_w(params["wq"]) * scale).astype(bf16)     # fold 1/sqrt(D)
    bq3 = (heads_b(params["bq"]) * scale).astype(f32)
    wk3 = heads_w(params["wk"]).astype(bf16)
    bk3 = heads_b(params["bk"]).astype(f32)
    wv3 = heads_w(params["wv"]).astype(bf16)
    bv3 = heads_b(params["bv"]).astype(f32)
    wo3 = params["wo"].reshape(H, D, C).astype(bf16)
    bo = params["bo"].astype(f32)
    g1, be1 = params["g1"].astype(f32), params["be1"].astype(f32)
    w1 = params["w1"].astype(bf16)
    b1 = params["bf1"].astype(f32)
    w2 = params["w2"].astype(bf16)
    b2 = params["bf2"].astype(f32)
    g2, be2 = params["g2"].astype(f32), params["be2"].astype(f32)

    x_bf = x.astype(bf16)                       # halve the activation DMA
    mask3 = mask.reshape(B, 1, T).astype(f32)

    weight_args = (wq3, bq3, wk3, bk3, wv3, bv3, wo3, bo, g1, be1,
                   w1, b1, w2, b2, g2, be2)
    weight_bytes = sum(int(a.size) * int(a.dtype.itemsize) for a in weight_args)

    single_buf = _supports_single_buffered_weights()

    def wspec(shape):
        idx = lambda b, qi, _n=len(shape): (0,) * _n
        if single_buf:
            # Constant index_map: weights never change across the grid, so
            # double-buffering would only double their VMEM residency.
            return pl.BlockSpec(shape, idx, pipeline_mode=pl.Buffered(1))
        return pl.BlockSpec(shape, idx)

    in_specs = [
        pl.BlockSpec((1, T, C), lambda b, qi: (b, 0, 0)),   # x: full seq (bf16)
        pl.BlockSpec((1, 1, T), lambda b, qi: (b, 0, 0)),   # mask
        wspec((H, C, D)), wspec((H, 1, D)),                 # q proj
        wspec((H, C, D)), wspec((H, 1, D)),                 # k proj
        wspec((H, C, D)), wspec((H, 1, D)),                 # v proj
        wspec((H, D, C)), wspec((1, C)),                    # out proj
        wspec((1, C)), wspec((1, C)),                       # ln_1
        wspec((C, F)), wspec((1, F)),                       # fc1
        wspec((F, C)), wspec((1, C)),                       # fc2
        wspec((1, C)), wspec((1, C)),                       # ln_2
    ]

    scratch_shapes = [
        pltpu.VMEM((H, T, D), bf16),    # K heads (persistent per batch element)
        pltpu.VMEM((H, T, D), bf16),    # V heads
    ]

    # VMEM residency estimate (weights + pipelined blocks + scratch + softmax temps).
    wbufs = 1 if single_buf else 2
    resident = (wbufs * weight_bytes
                + 2 * T * C * 2            # x block (bf16), double-buffered
                + 2 * T * 4                # mask block
                + 2 * TQ * C * 4           # output block
                + 2 * H * T * D * 2        # K/V head scratch
                + 3 * H * TQ * T * 4)      # scores / p f32 temporaries
    try:
        vmem_cap = pltpu.get_tpu_info().vmem_capacity_bytes
    except Exception:
        vmem_cap = 128 * 1024 * 1024
    vmem_limit = int(min(int(0.85 * vmem_cap), max(32 << 20, 2 * resident)))

    # Advisory cost estimate (K/V projected once per batch element).
    flops = (2 * B * T * C * (3 * C)       # q/k/v projections
             + 4 * B * T * T * C           # scores + attn @ v
             + 2 * B * T * C * C           # output projection
             + 4 * B * T * C * F)          # ffn
    transcendentals = B * H * T * T + B * T * F
    bytes_accessed = weight_bytes + B * T * C * 2 + B * T * 4 + B * T * C * 4

    call = pl.pallas_call(
        functools.partial(bert_block_kernel, H),
        out_shape=jax.ShapeDtypeStruct((B, T, C), jnp.float32),
        grid_spec=pltpu.PrefetchScalarGridSpec(
            num_scalar_prefetch=0,
            grid=(B, nq),
            in_specs=in_specs,
            out_specs=pl.BlockSpec((1, TQ, C), lambda b, qi: (b, qi, 0)),
            scratch_shapes=scratch_shapes,
        ),
        compiler_params=pltpu.CompilerParams(
            # qi must be sequential so the per-batch K/V scratch is reused.
            dimension_semantics=("parallel", "arbitrary"),
            vmem_limit_bytes=vmem_limit,
        ),
        cost_estimate=pl.CostEstimate(flops=int(flops),
                                      transcendentals=int(transcendentals),
                                      bytes_accessed=int(bytes_accessed)),
    )
    return call(x_bf, mask3, *weight_args)


# ---------------------------- pure-JAX reference -------------------------------

def ref_block(x, mask, p, n_heads):
    B, T, C = x.shape
    D = C // n_heads
    q = x @ p["wq"] + p["bq"]
    k = x @ p["wk"] + p["bk"]
    v = x @ p["wv"] + p["bv"]
    q = q.reshape(B, T, n_heads, D).transpose(0, 2, 1, 3)
    k = k.reshape(B, T, n_heads, D).transpose(0, 2, 1, 3)
    v = v.reshape(B, T, n_heads, D).transpose(0, 2, 1, 3)
    attn = (q @ jnp.swapaxes(k, -1, -2)) / math.sqrt(D)
    attn = attn - 1e30 * (1.0 - mask[:, None, None, :].astype(jnp.float32))
    attn = jax.nn.softmax(attn, axis=-1)
    y = (attn @ v).transpose(0, 2, 1, 3).reshape(B, T, C)
    h1 = _layer_norm(x + (y @ p["wo"] + p["bo"]), p["g1"], p["be1"])
    f = _new_gelu(h1 @ p["w1"] + p["bf1"]) @ p["w2"] + p["bf2"]
    return _layer_norm(h1 + f, p["g2"], p["be2"])


# ---------------------------------- main ---------------------------------------

if __name__ == "__main__":
    B, T, C, H = 2, 8, 32, 4
    Fdim = 2 * C  # cfg.dim_ff

    key = jax.random.PRNGKey(0)
    keys = jax.random.split(key, 14)
    s = 0.02
    params = {
        "wq": s * jax.random.normal(keys[0], (C, C), jnp.float32),
        "bq": s * jax.random.normal(keys[1], (1, C), jnp.float32),
        "wk": s * jax.random.normal(keys[2], (C, C), jnp.float32),
        "bk": s * jax.random.normal(keys[3], (1, C), jnp.float32),
        "wv": s * jax.random.normal(keys[4], (C, C), jnp.float32),
        "bv": s * jax.random.normal(keys[5], (1, C), jnp.float32),
        "wo": s * jax.random.normal(keys[6], (C, C), jnp.float32),
        "bo": s * jax.random.normal(keys[7], (1, C), jnp.float32),
        "g1": jnp.ones((1, C), jnp.float32),
        "be1": jnp.zeros((1, C), jnp.float32),
        "w1": s * jax.random.normal(keys[8], (C, Fdim), jnp.float32),
        "bf1": s * jax.random.normal(keys[9], (1, Fdim), jnp.float32),
        "w2": s * jax.random.normal(keys[10], (Fdim, C), jnp.float32),
        "bf2": s * jax.random.normal(keys[11], (1, C), jnp.float32),
        "g2": jnp.ones((1, C), jnp.float32),
        "be2": jnp.zeros((1, C), jnp.float32),
    }

    # ---- test 1: single query tile (nq = 1) ----
    x = jax.random.normal(keys[12], (B, T, C), jnp.float32)
    mask = jnp.ones((B, T), jnp.float32).at[1, -2:].set(0.0)
    out = jax.block_until_ready(bert_block(x, mask, params, H))
    ref = ref_block(x, mask, params, H)
    assert out.shape == (B, T, C)
    err = float(jnp.max(jnp.abs(out - ref)))
    # bf16 inputs/MXU + approx reciprocal -> looser tolerance than pure f32
    assert err < 5e-2, f"mismatch vs pure-JAX reference (nq=1): max abs err = {err}"

    # ---- test 2: multiple query tiles (nq = 2) exercises the persistent K/V
    #      scratch reuse across qi > 0 ----
    T2 = 16
    x2 = jax.random.normal(keys[13], (B, T2, C), jnp.float32)
    mask2 = jnp.ones((B, T2), jnp.float32).at[0, :3].set(0.0).at[1, -5:].set(0.0)
    out2 = jax.block_until_ready(bert_block(x2, mask2, params, H, q_tile=8))
    ref2 = ref_block(x2, mask2, params, H)
    assert out2.shape == (B, T2, C)
    err2 = float(jnp.max(jnp.abs(out2 - ref2)))
    assert err2 < 5e-2, f"mismatch vs pure-JAX reference (nq=2): max abs err = {err2}"

    print("KERNEL_OK")
</pallas_src>

<mosaic_0001>
module attributes {stable_mosaic.version = 11 : i64} {
  func.func @probe_kernel(%arg0: i32, %arg1: memref<8x128xf32, #tpu.memory_space<vmem>>, %arg2: memref<8x128xf32, #tpu.memory_space<vmem>>) attributes {dimension_semantics = [#tpu.dimension_semantics<arbitrary>], iteration_bounds = array<i64: 2>, scalar_prefetch = 0 : i64, scratch_operands = 0 : i64, tpu.core_type = #tpu.core_type<tc>, window_params = [{pipeline_mode = #tpu.pipeline_mode<synchronous>, transform_indices = @transform_0, window_bounds = array<i64: 8, 128>}, {transform_indices = @transform_1, window_bounds = array<i64: 8, 128>}]} {
    %c0 = arith.constant 0 : index
    %c0_0 = arith.constant 0 : index
    %0 = vector.load %arg1[%c0, %c0_0] : memref<8x128xf32, #tpu.memory_space<vmem>>, vector<8x128xf32>
    %cst = arith.constant 2.000000e+00 : f32
    %1 = vector.broadcast %cst : f32 to vector<8x128xf32>
    %2 = arith.mulf %0, %1 : vector<8x128xf32>
    %c0_1 = arith.constant 0 : index
    %c0_2 = arith.constant 0 : index
    %3 = vector.load %arg2[%c0_1, %c0_2] : memref<8x128xf32, #tpu.memory_space<vmem>>, vector<8x128xf32>
    tpu.vector_store %arg2[%c0_1, %c0_2], %2 {strides = array<i32>} : memref<8x128xf32, #tpu.memory_space<vmem>>, vector<8x128xf32>,
    return
  }
  func.func @transform_0(%arg0: i32) -> (i32, i32) {
    %c0_i32 = arith.constant 0 : i32
    %c0_i32_0 = arith.constant 0 : i32
    %c0_i32_1 = arith.constant 0 : i32
    return %c0_i32, %c0_i32_0 : i32, i32
  }
  func.func @transform_1(%arg0: i32) -> (i32, i32) {
    %c0_i32 = arith.constant 0 : i32
    %c0_i32_0 = arith.constant 0 : i32
    return %arg0, %c0_i32 : i32, i32
  }
}

module attributes {stable_mosaic.version = 11 : i64} {
  func.func @bert_block_kernel(%arg0: i32, %arg1: i32, %arg2: memref<1x8x32xbf16, #tpu.memory_space<vmem>>, %arg3: memref<1x1x8xf32, #tpu.memory_space<vmem>>, %arg4: memref<4x32x8xbf16, #tpu.memory_space<vmem>>, %arg5: memref<4x1x8xf32, #tpu.memory_space<vmem>>, %arg6: memref<4x32x8xbf16, #tpu.memory_space<vmem>>, %arg7: memref<4x1x8xf32, #tpu.memory_space<vmem>>, %arg8: memref<4x32x8xbf16, #tpu.memory_space<vmem>>, %arg9: memref<4x1x8xf32, #tpu.memory_space<vmem>>, %arg10: memref<4x8x32xbf16, #tpu.memory_space<vmem>>, %arg11: memref<1x32xf32, #tpu.memory_space<vmem>>, %arg12: memref<1x32xf32, #tpu.memory_space<vmem>>, %arg13: memref<1x32xf32, #tpu.memory_space<vmem>>, %arg14: memref<32x64xbf16, #tpu.memory_space<vmem>>, %arg15: memref<1x64xf32, #tpu.memory_space<vmem>>, %arg16: memref<64x32xbf16, #tpu.memory_space<vmem>>, %arg17: memref<1x32xf32, #tpu.memory_space<vmem>>, %arg18: memref<1x32xf32, #tpu.memory_space<vmem>>, %arg19: memref<1x32xf32, #tpu.memory_space<vmem>>, %arg20: memref<1x8x32xf32, #tpu.memory_space<vmem>>, %arg21: memref<4x8x8xbf16, #tpu.memory_space<vmem>>, %arg22: memref<4x8x8xbf16, #tpu.memory_space<vmem>>) attributes {dimension_semantics = [#tpu.dimension_semantics<parallel>, #tpu.dimension_semantics<arbitrary>], iteration_bounds = array<i64: 2, 1>, scalar_prefetch = 0 : i64, scratch_operands = 2 : i64, tpu.core_type = #tpu.core_type<tc>, window_params = [{transform_indices = @transform_0, window_bounds = array<i64: 1, 8, 32>}, {transform_indices = @transform_1, window_bounds = array<i64: 1, 1, 8>}, {pipeline_mode = #tpu.pipeline_mode<synchronous>, transform_indices = @transform_2, window_bounds = array<i64: 4, 32, 8>}, {pipeline_mode = #tpu.pipeline_mode<synchronous>, transform_indices = @transform_3, window_bounds = array<i64: 4, 1, 8>}, {pipeline_mode = #tpu.pipeline_mode<synchronous>, transform_indices = @transform_4, window_bounds = array<i64: 4, 32, 8>}, {pipeline_mode = #tpu.pipeline_mode<synchronous>, transform_indices = @transform_5, window_bounds = array<i64: 4, 1, 8>}, {pipeline_mode = #tpu.pipeline_mode<synchronous>, transform_indices = @transform_6, window_bounds = array<i64: 4, 32, 8>}, {pipeline_mode = #tpu.pipeline_mode<synchronous>, transform_indices = @transform_7, window_bounds = array<i64: 4, 1, 8>}, {pipeline_mode = #tpu.pipeline_mode<synchronous>, transform_indices = @transform_8, window_bounds = array<i64: 4, 8, 32>}, {pipeline_mode = #tpu.pipeline_mode<synchronous>, transform_indices = @transform_9, window_bounds = array<i64: 1, 32>}, {pipeline_mode = #tpu.pipeline_mode<synchronous>, transform_indices = @transform_10, window_bounds = array<i64: 1, 32>}, {pipeline_mode = #tpu.pipeline_mode<synchronous>, transform_indices = @transform_11, window_bounds = array<i64: 1, 32>}, {pipeline_mode = #tpu.pipeline_mode<synchronous>, transform_indices = @transform_12, window_bounds = array<i64: 32, 64>}, {pipeline_mode = #tpu.pipeline_mode<synchronous>, transform_indices = @transform_13, window_bounds = array<i64: 1, 64>}, {pipeline_mode = #tpu.pipeline_mode<synchronous>, transform_indices = @transform_14, window_bounds = array<i64: 64, 32>}, {pipeline_mode = #tpu.pipeline_mode<synchronous>, transform_indices = @transform_15, window_bounds = array<i64: 1, 32>}, {pipeline_mode = #tpu.pipeline_mode<synchronous>, transform_indices = @transform_16, window_bounds = array<i64: 1, 32>}, {pipeline_mode = #tpu.pipeline_mode<synchronous>, transform_indices = @transform_17, window_bounds = array<i64: 1, 32>}, {transform_indices = @transform_18, window_bounds = array<i64: 1, 8, 32>}]} {
    %c0_i32 = arith.constant 0 : i32
    %0 = arith.cmpi eq, %arg1, %c0_i32 : i32
    %1 = arith.extui %0 : i1 to i32
    %c0_i32_0 = arith.constant 0 : i32
    %2 = arith.cmpi ne, %1, %c0_i32_0 : i32
    scf.if %2 {
      %c0_65 = arith.constant 0 : index
      %c0_66 = arith.constant 0 : index
      %c0_67 = arith.constant 0 : index
      %120 = vector.load %arg2[%c0_65, %c0_66, %c0_67] : memref<1x8x32xbf16, #tpu.memory_space<vmem>>, vector<1x8x32xbf16>
      %121 = vector.shape_cast %120 : vector<1x8x32xbf16> to vector<8x32xbf16>
      %122 = vector.shape_cast %121 : vector<8x32xbf16> to vector<1x8x32xbf16>
      %123 = vector.broadcast %122 : vector<1x8x32xbf16> to vector<4x8x32xbf16>
      %c0_68 = arith.constant 0 : index
      %c0_69 = arith.constant 0 : index
      %c0_70 = arith.constant 0 : index
      %124 = vector.load %arg6[%c0_68, %c0_69, %c0_70] : memref<4x32x8xbf16, #tpu.memory_space<vmem>>, vector<4x32x8xbf16>
      "tpu.trace_start"() <{level = 10 : i32, message = "htc,hcd->htd"}> : () -> ()
      %cst_71 = arith.constant dense<0.000000e+00> : vector<4x8x8xf32>
      %125 = tpu.matmul %123, %124, %cst_71 {dimension_numbers = #tpu.dot_dimension_numbers<[2], [1], [1], [2], [0, 0, 0, 1, 1, 2], [0], [0]>} : vector<4x8x32xbf16>, vector<4x32x8xbf16>, vector<4x8x8xf32> -> vector<4x8x8xf32>
      "tpu.trace_stop"() : () -> ()
      %c0_72 = arith.constant 0 : index
      %c0_73 = arith.constant 0 : index
      %c0_74 = arith.constant 0 : index
      %126 = vector.load %arg7[%c0_72, %c0_73, %c0_74] : memref<4x1x8xf32, #tpu.memory_space<vmem>>, vector<4x1x8xf32>
      %127 = vector.broadcast %126 : vector<4x1x8xf32> to vector<4x8x8xf32>
      %128 = arith.addf %125, %127 : vector<4x8x8xf32>
      %c0_75 = arith.constant 0 : index
      %c0_76 = arith.constant 0 : index
      %c0_77 = arith.constant 0 : index
      %129 = vector.load %arg8[%c0_75, %c0_76, %c0_77] : memref<4x32x8xbf16, #tpu.memory_space<vmem>>, vector<4x32x8xbf16>
      "tpu.trace_start"() <{level = 10 : i32, message = "htc,hcd->htd"}> : () -> ()
      %cst_78 = arith.constant dense<0.000000e+00> : vector<4x8x8xf32>
      %130 = tpu.matmul %123, %129, %cst_78 {dimension_numbers = #tpu.dot_dimension_numbers<[2], [1], [1], [2], [0, 0, 0, 1, 1, 2], [0], [0]>} : vector<4x8x32xbf16>, vector<4x32x8xbf16>, vector<4x8x8xf32> -> vector<4x8x8xf32>
      "tpu.trace_stop"() : () -> ()
      %c0_79 = arith.constant 0 : index
      %c0_80 = arith.constant 0 : index
      %c0_81 = arith.constant 0 : index
      %131 = vector.load %arg9[%c0_79, %c0_80, %c0_81] : memref<4x1x8xf32, #tpu.memory_space<vmem>>, vector<4x1x8xf32>
      %132 = vector.broadcast %131 : vector<4x1x8xf32> to vector<4x8x8xf32>
      %133 = arith.addf %130, %132 : vector<4x8x8xf32>
      %134 = arith.truncf %128 : vector<4x8x8xf32> to vector<4x8x8xbf16>
      %c0_82 = arith.constant 0 : index
      %c0_83 = arith.constant 0 : index
      %c0_84 = arith.constant 0 : index
      %135 = vector.load %arg21[%c0_82, %c0_83, %c0_84] : memref<4x8x8xbf16, #tpu.memory_space<vmem>>, vector<4x8x8xbf16>
      tpu.vector_store %arg21[%c0_82, %c0_83, %c0_84], %134 {strides = array<i32>} : memref<4x8x8xbf16, #tpu.memory_space<vmem>>, vector<4x8x8xbf16>,
      %136 = arith.truncf %133 : vector<4x8x8xf32> to vector<4x8x8xbf16>
      %c0_85 = arith.constant 0 : index
      %c0_86 = arith.constant 0 : index
      %c0_87 = arith.constant 0 : index
      %137 = vector.load %arg22[%c0_85, %c0_86, %c0_87] : memref<4x8x8xbf16, #tpu.memory_space<vmem>>, vector<4x8x8xbf16>
      tpu.vector_store %arg22[%c0_85, %c0_86, %c0_87], %136 {strides = array<i32>} : memref<4x8x8xbf16, #tpu.memory_space<vmem>>, vector<4x8x8xbf16>,
    } else {
    }
    %c8_i32 = arith.constant 8 : i32
    %3 = arith.muli %arg1, %c8_i32 : i32
    %4 = tpu.assume_multiple %3, 8 : i32
    %c0 = arith.constant 0 : index
    %5 = arith.index_cast %4 : i32 to index
    %c0_1 = arith.constant 0 : index
    %6 = vector.load %arg2[%c0, %5, %c0_1] : memref<1x8x32xbf16, #tpu.memory_space<vmem>>, vector<1x8x32xbf16>
    %7 = vector.shape_cast %6 : vector<1x8x32xbf16> to vector<8x32xbf16>
    %8 = arith.extf %7 : vector<8x32xbf16> to vector<8x32xf32>
    %9 = vector.shape_cast %7 : vector<8x32xbf16> to vector<1x8x32xbf16>
    %10 = vector.broadcast %9 : vector<1x8x32xbf16> to vector<4x8x32xbf16>
    %c0_2 = arith.constant 0 : index
    %c0_3 = arith.constant 0 : index
    %c0_4 = arith.constant 0 : index
    %11 = vector.load %arg4[%c0_2, %c0_3, %c0_4] : memref<4x32x8xbf16, #tpu.memory_space<vmem>>, vector<4x32x8xbf16>
    "tpu.trace_start"() <{level = 10 : i32, message = "hqc,hcd->hqd"}> : () -> ()
    %cst = arith.constant dense<0.000000e+00> : vector<4x8x8xf32>
    %12 = tpu.matmul %10, %11, %cst {dimension_numbers = #tpu.dot_dimension_numbers<[2], [1], [1], [2], [0, 0, 0, 1, 1, 2], [0], [0]>} : vector<4x8x32xbf16>, vector<4x32x8xbf16>, vector<4x8x8xf32> -> vector<4x8x8xf32>
    "tpu.trace_stop"() : () -> ()
    %c0_5 = arith.constant 0 : index
    %c0_6 = arith.constant 0 : index
    %c0_7 = arith.constant 0 : index
    %13 = vector.load %arg5[%c0_5, %c0_6, %c0_7] : memref<4x1x8xf32, #tpu.memory_space<vmem>>, vector<4x1x8xf32>
    %14 = vector.broadcast %13 : vector<4x1x8xf32> to vector<4x8x8xf32>
    %15 = arith.addf %12, %14 : vector<4x8x8xf32>
    %c0_8 = arith.constant 0 : index
    %c0_9 = arith.constant 0 : index
    %c0_10 = arith.constant 0 : index
    %16 = vector.load %arg3[%c0_8, %c0_9, %c0_10] : memref<1x1x8xf32, #tpu.memory_space<vmem>>, vector<1x1x8xf32>
    %cst_11 = arith.constant 1.000000e+00 : f32
    %17 = vector.broadcast %cst_11 : f32 to vector<1x1x8xf32>
    %18 = arith.subf %17, %16 : vector<1x1x8xf32>
    %cst_12 = arith.constant 1.000000e+30 : f32
    %19 = vector.broadcast %cst_12 : f32 to vector<1x1x8xf32>
    %20 = arith.mulf %19, %18 : vector<1x1x8xf32>
    %21 = arith.truncf %15 : vector<4x8x8xf32> to vector<4x8x8xbf16>
    %c0_13 = arith.constant 0 : index
    %c0_14 = arith.constant 0 : index
    %c0_15 = arith.constant 0 : index
    %22 = vector.load %arg21[%c0_13, %c0_14, %c0_15] : memref<4x8x8xbf16, #tpu.memory_space<vmem>>, vector<4x8x8xbf16>
    "tpu.trace_start"() <{level = 10 : i32, message = "hqd,hkd->hqk"}> : () -> ()
    %cst_16 = arith.constant dense<0.000000e+00> : vector<4x8x8xf32>
    %23 = tpu.matmul %21, %22, %cst_16 {dimension_numbers = #tpu.dot_dimension_numbers<[2], [2], [1], [1], [0, 0, 0, 1, 1, 1], [0], [0]>} : vector<4x8x8xbf16>, vector<4x8x8xbf16>, vector<4x8x8xf32> -> vector<4x8x8xf32>
    "tpu.trace_stop"() : () -> ()
    %24 = vector.broadcast %20 : vector<1x1x8xf32> to vector<4x8x8xf32>
    %25 = arith.subf %23, %24 : vector<4x8x8xf32>
    %cst_17 = arith.constant dense<0xFF800000> : vector<4x8xf32>
    %26 = vector.multi_reduction <maximumf>, %25, %cst_17 [2] : vector<4x8x8xf32> to vector<4x8xf32>
    %27 = vector.shape_cast %26 : vector<4x8xf32> to vector<4x8x1xf32>
    %28 = vector.broadcast %27 : vector<4x8x1xf32> to vector<4x8x8xf32>
    %29 = arith.subf %25, %28 : vector<4x8x8xf32>
    %30 = math.exp %29 : vector<4x8x8xf32>
    %cst_18 = arith.constant dense<0.000000e+00> : vector<4x8xf32>
    %31 = vector.multi_reduction <add>, %30, %cst_18 [2] : vector<4x8x8xf32> to vector<4x8xf32>
    %32 = vector.shape_cast %31 : vector<4x8xf32> to vector<4x8x1xf32>
    %33 = arith.truncf %30 : vector<4x8x8xf32> to vector<4x8x8xbf16>
    %c0_19 = arith.constant 0 : index
    %c0_20 = arith.constant 0 : index
    %c0_21 = arith.constant 0 : index
    %34 = vector.load %arg22[%c0_19, %c0_20, %c0_21] : memref<4x8x8xbf16, #tpu.memory_space<vmem>>, vector<4x8x8xbf16>
    "tpu.trace_start"() <{level = 10 : i32, message = "hqk,hkd->hqd"}> : () -> ()
    %cst_22 = arith.constant dense<0.000000e+00> : vector<4x8x8xf32>
    %35 = tpu.matmul %33, %34, %cst_22 {dimension_numbers = #tpu.dot_dimension_numbers<[2], [1], [1], [2], [0, 0, 0, 1, 1, 2], [0], [0]>} : vector<4x8x8xbf16>, vector<4x8x8xbf16>, vector<4x8x8xf32> -> vector<4x8x8xf32>
    "tpu.trace_stop"() : () -> ()
    %36 = tpu.reciprocal %32 {approx = true} : vector<4x8x1xf32> -> vector<4x8x1xf32>
    %37 = vector.broadcast %36 : vector<4x8x1xf32> to vector<4x8x8xf32>
    %38 = arith.mulf %35, %37 : vector<4x8x8xf32>
    %39 = arith.truncf %38 : vector<4x8x8xf32> to vector<4x8x8xbf16>
    %c0_23 = arith.constant 0 : index
    %c0_24 = arith.constant 0 : index
    %c0_25 = arith.constant 0 : index
    %40 = vector.load %arg10[%c0_23, %c0_24, %c0_25] : memref<4x8x32xbf16, #tpu.memory_space<vmem>>, vector<4x8x32xbf16>
    "tpu.trace_start"() <{level = 10 : i32, message = "hqd,hdc->hqc"}> : () -> ()
    %cst_26 = arith.constant dense<0.000000e+00> : vector<4x8x32xf32>
    %41 = tpu.matmul %39, %40, %cst_26 {dimension_numbers = #tpu.dot_dimension_numbers<[2], [1], [1], [2], [0, 0, 0, 1, 1, 2], [0], [0]>} : vector<4x8x8xbf16>, vector<4x8x32xbf16>, vector<4x8x32xf32> -> vector<4x8x32xf32>
    "tpu.trace_stop"() : () -> ()
    %cst_27 = arith.constant dense<0.000000e+00> : vector<8x32xf32>
    %42 = vector.multi_reduction <add>, %41, %cst_27 [0] : vector<4x8x32xf32> to vector<8x32xf32>
    %c0_28 = arith.constant 0 : index
    %c0_29 = arith.constant 0 : index
    %43 = vector.load %arg11[%c0_28, %c0_29] : memref<1x32xf32, #tpu.memory_space<vmem>>, vector<1x32xf32>
    %44 = vector.broadcast %43 : vector<1x32xf32> to vector<8x32xf32>
    %45 = arith.addf %42, %44 : vector<8x32xf32>
    %46 = arith.addf %8, %45 : vector<8x32xf32>
    %c0_30 = arith.constant 0 : index
    %c0_31 = arith.constant 0 : index
    %47 = vector.load %arg12[%c0_30, %c0_31] : memref<1x32xf32, #tpu.memory_space<vmem>>, vector<1x32xf32>
    %c0_32 = arith.constant 0 : index
    %c0_33 = arith.constant 0 : index
    %48 = vector.load %arg13[%c0_32, %c0_33] : memref<1x32xf32, #tpu.memory_space<vmem>>, vector<1x32xf32>
    %cst_34 = arith.constant dense<0.000000e+00> : vector<8xf32>
    %49 = vector.multi_reduction <add>, %46, %cst_34 [1] : vector<8x32xf32> to vector<8xf32>
    %50 = vector.shape_cast %49 : vector<8xf32> to vector<8x1xf32>
    %cst_35 = arith.constant 3.200000e+01 : f32
    %51 = vector.broadcast %cst_35 : f32 to vector<8x1xf32>
    %52 = arith.divf %50, %51 : vector<8x1xf32>
    %53 = vector.broadcast %52 : vector<8x1xf32> to vector<8x32xf32>
    %54 = arith.subf %46, %53 : vector<8x32xf32>
    %55 = arith.mulf %54, %54 : vector<8x32xf32>
    %cst_36 = arith.constant dense<0.000000e+00> : vector<8xf32>
    %56 = vector.multi_reduction <add>, %55, %cst_36 [1] : vector<8x32xf32> to vector<8xf32>
    %57 = vector.shape_cast %56 : vector<8xf32> to vector<8x1xf32>
    %cst_37 = arith.constant 3.200000e+01 : f32
    %58 = vector.broadcast %cst_37 : f32 to vector<8x1xf32>
    %59 = arith.divf %57, %58 : vector<8x1xf32>
    %cst_38 = arith.constant 9.99999974E-6 : f32
    %60 = vector.broadcast %cst_38 : f32 to vector<8x1xf32>
    %61 = arith.addf %59, %60 : vector<8x1xf32>
    %62 = math.rsqrt %61 : vector<8x1xf32>
    %63 = vector.broadcast %62 : vector<8x1xf32> to vector<8x32xf32>
    %64 = arith.mulf %54, %63 : vector<8x32xf32>
    %65 = vector.broadcast %47 : vector<1x32xf32> to vector<8x32xf32>
    %66 = arith.mulf %64, %65 : vector<8x32xf32>
    %67 = vector.broadcast %48 : vector<1x32xf32> to vector<8x32xf32>
    %68 = arith.addf %66, %67 : vector<8x32xf32>
    %69 = arith.truncf %68 : vector<8x32xf32> to vector<8x32xbf16>
    %c0_39 = arith.constant 0 : index
    %c0_40 = arith.constant 0 : index
    %70 = vector.load %arg14[%c0_39, %c0_40] : memref<32x64xbf16, #tpu.memory_space<vmem>>, vector<32x64xbf16>
    %cst_41 = arith.constant dense<0.000000e+00> : vector<8x64xf32>
    %71 = tpu.matmul %69, %70, %cst_41 {dimension_numbers = #tpu.dot_dimension_numbers<[1], [0], [0], [1], [0, 0, 1, 1], [], []>} : vector<8x32xbf16>, vector<32x64xbf16>, vector<8x64xf32> -> vector<8x64xf32>
    %c0_42 = arith.constant 0 : index
    %c0_43 = arith.constant 0 : index
    %72 = vector.load %arg15[%c0_42, %c0_43] : memref<1x64xf32, #tpu.memory_space<vmem>>, vector<1x64xf32>
    %73 = vector.broadcast %72 : vector<1x64xf32> to vector<8x64xf32>
    %74 = arith.addf %71, %73 : vector<8x64xf32>
    %cst_44 = arith.constant 5.000000e-01 : f32
    %75 = vector.broadcast %cst_44 : f32 to vector<8x64xf32>
    %76 = arith.mulf %75, %74 : vector<8x64xf32>
    %cst_45 = arith.constant 4.471500e-02 : f32
    %77 = vector.broadcast %cst_45 : f32 to vector<8x64xf32>
    %78 = arith.mulf %77, %74 : vector<8x64xf32>
    %79 = arith.mulf %78, %74 : vector<8x64xf32>
    %80 = arith.mulf %79, %74 : vector<8x64xf32>
    %81 = arith.addf %74, %80 : vector<8x64xf32>
    %cst_46 = arith.constant 0.797884583 : f32
    %82 = vector.broadcast %cst_46 : f32 to vector<8x64xf32>
    %83 = arith.mulf %82, %81 : vector<8x64xf32>
    %84 = math.tanh %83 : vector<8x64xf32>
    %cst_47 = arith.constant 1.000000e+00 : f32
    %85 = vector.broadcast %cst_47 : f32 to vector<8x64xf32>
    %86 = arith.addf %85, %84 : vector<8x64xf32>
    %87 = arith.mulf %76, %86 : vector<8x64xf32>
    %88 = arith.truncf %87 : vector<8x64xf32> to vector<8x64xbf16>
    %c0_48 = arith.constant 0 : index
    %c0_49 = arith.constant 0 : index
    %89 = vector.load %arg16[%c0_48, %c0_49] : memref<64x32xbf16, #tpu.memory_space<vmem>>, vector<64x32xbf16>
    %cst_50 = arith.constant dense<0.000000e+00> : vector<8x32xf32>
    %90 = tpu.matmul %88, %89, %cst_50 {dimension_numbers = #tpu.dot_dimension_numbers<[1], [0], [0], [1], [0, 0, 1, 1], [], []>} : vector<8x64xbf16>, vector<64x32xbf16>, vector<8x32xf32> -> vector<8x32xf32>
    %c0_51 = arith.constant 0 : index
    %c0_52 = arith.constant 0 : index
    %91 = vector.load %arg17[%c0_51, %c0_52] : memref<1x32xf32, #tpu.memory_space<vmem>>, vector<1x32xf32>
    %92 = vector.broadcast %91 : vector<1x32xf32> to vector<8x32xf32>
    %93 = arith.addf %90, %92 : vector<8x32xf32>
    %94 = arith.addf %68, %93 : vector<8x32xf32>
    %c0_53 = arith.constant 0 : index
    %c0_54 = arith.constant 0 : index
    %95 = vector.load %arg18[%c0_53, %c0_54] : memref<1x32xf32, #tpu.memory_space<vmem>>, vector<1x32xf32>
    %c0_55 = arith.constant 0 : index
    %c0_56 = arith.constant 0 : index
    %96 = vector.load %arg19[%c0_55, %c0_56] : memref<1x32xf32, #tpu.memory_space<vmem>>, vector<1x32xf32>
    %cst_57 = arith.constant dense<0.000000e+00> : vector<8xf32>
    %97 = vector.multi_reduction <add>, %94, %cst_57 [1] : vector<8x32xf32> to vector<8xf32>
    %98 = vector.shape_cast %97 : vector<8xf32> to vector<8x1xf32>
    %cst_58 = arith.constant 3.200000e+01 : f32
    %99 = vector.broadcast %cst_58 : f32 to vector<8x1xf32>
    %100 = arith.divf %98, %99 : vector<8x1xf32>
    %101 = vector.broadcast %100 : vector<8x1xf32> to vector<8x32xf32>
    %102 = arith.subf %94, %101 : vector<8x32xf32>
    %103 = arith.mulf %102, %102 : vector<8x32xf32>
    %cst_59 = arith.constant dense<0.000000e+00> : vector<8xf32>
    %104 = vector.multi_reduction <add>, %103, %cst_59 [1] : vector<8x32xf32> to vector<8xf32>
    %105 = vector.shape_cast %104 : vector<8xf32> to vector<8x1xf32>
    %cst_60 = arith.constant 3.200000e+01 : f32
    %106 = vector.broadcast %cst_60 : f32 to vector<8x1xf32>
    %107 = arith.divf %105, %106 : vector<8x1xf32>
    %cst_61 = arith.constant 9.99999974E-6 : f32
    %108 = vector.broadcast %cst_61 : f32 to vector<8x1xf32>
    %109 = arith.addf %107, %108 : vector<8x1xf32>
    %110 = math.rsqrt %109 : vector<8x1xf32>
    %111 = vector.broadcast %110 : vector<8x1xf32> to vector<8x32xf32>
    %112 = arith.mulf %102, %111 : vector<8x32xf32>
    %113 = vector.broadcast %95 : vector<1x32xf32> to vector<8x32xf32>
    %114 = arith.mulf %112, %113 : vector<8x32xf32>
    %115 = vector.broadcast %96 : vector<1x32xf32> to vector<8x32xf32>
    %116 = arith.addf %114, %115 : vector<8x32xf32>
    %c0_62 = arith.constant 0 : index
    %c0_63 = arith.constant 0 : index
    %c0_64 = arith.constant 0 : index
    %117 = vector.load %arg20[%c0_62, %c0_63, %c0_64] : memref<1x8x32xf32, #tpu.memory_space<vmem>>, vector<1x8x32xf32>
    %118 = vector.shape_cast %117 : vector<1x8x32xf32> to vector<8x32xf32>
    %119 = vector.shape_cast %116 : vector<8x32xf32> to vector<1x8x32xf32>
    tpu.vector_store %arg20[%c0_62, %c0_63, %c0_64], %119 {strides = array<i32>} : memref<1x8x32xf32, #tpu.memory_space<vmem>>, vector<1x8x32xf32>,
    return
  }
  func.func @transform_0(%arg0: i32, %arg1: i32) -> (i32, i32, i32) {
    %c0_i32 = arith.constant 0 : i32
    %c0_i32_0 = arith.constant 0 : i32
    %c0_i32_1 = arith.constant 0 : i32
    return %arg0, %c0_i32, %c0_i32_0 : i32, i32, i32
  }
  func.func @transform_1(%arg0: i32, %arg1: i32) -> (i32, i32, i32) {
    %c0_i32 = arith.constant 0 : i32
    %c0_i32_0 = arith.constant 0 : i32
    %c0_i32_1 = arith.constant 0 : i32
    return %arg0, %c0_i32, %c0_i32_0 : i32, i32, i32
  }
  func.func @transform_2(%arg0: i32, %arg1: i32) -> (i32, i32, i32) {
    %c0_i32 = arith.constant 0 : i32
    %c0_i32_0 = arith.constant 0 : i32
    %c0_i32_1 = arith.constant 0 : i32
    %c0_i32_2 = arith.constant 0 : i32
    return %c0_i32, %c0_i32_0, %c0_i32_1 : i32, i32, i32
  }
  func.func @transform_3(%arg0: i32, %arg1: i32) -> (i32, i32, i32) {
    %c0_i32 = arith.constant 0 : i32
    %c0_i32_0 = arith.constant 0 : i32
    %c0_i32_1 = arith.constant 0 : i32
    %c0_i32_2 = arith.constant 0 : i32
    return %c0_i32, %c0_i32_0, %c0_i32_1 : i32, i32, i32
  }
  func.func @transform_4(%arg0: i32, %arg1: i32) -> (i32, i32, i32) {
    %c0_i32 = arith.constant 0 : i32
    %c0_i32_0 = arith.constant 0 : i32
    %c0_i32_1 = arith.constant 0 : i32
    %c0_i32_2 = arith.constant 0 : i32
    return %c0_i32, %c0_i32_0, %c0_i32_1 : i32, i32, i32
  }
  func.func @transform_5(%arg0: i32, %arg1: i32) -> (i32, i32, i32) {
    %c0_i32 = arith.constant 0 : i32
    %c0_i32_0 = arith.constant 0 : i32
    %c0_i32_1 = arith.constant 0 : i32
    %c0_i32_2 = arith.constant 0 : i32
    return %c0_i32, %c0_i32_0, %c0_i32_1 : i32, i32, i32
  }
  func.func @transform_6(%arg0: i32, %arg1: i32) -> (i32, i32, i32) {
    %c0_i32 = arith.constant 0 : i32
    %c0_i32_0 = arith.constant 0 : i32
    %c0_i32_1 = arith.constant 0 : i32
    %c0_i32_2 = arith.constant 0 : i32
    return %c0_i32, %c0_i32_0, %c0_i32_1 : i32, i32, i32
  }
  func.func @transform_7(%arg0: i32, %arg1: i32) -> (i32, i32, i32) {
    %c0_i32 = arith.constant 0 : i32
    %c0_i32_0 = arith.constant 0 : i32
    %c0_i32_1 = arith.constant 0 : i32
    %c0_i32_2 = arith.constant 0 : i32
    return %c0_i32, %c0_i32_0, %c0_i32_1 : i32, i32, i32
  }
  func.func @transform_8(%arg0: i32, %arg1: i32) -> (i32, i32, i32) {
    %c0_i32 = arith.constant 0 : i32
    %c0_i32_0 = arith.constant 0 : i32
    %c0_i32_1 = arith.constant 0 : i32
    %c0_i32_2 = arith.constant 0 : i32
    return %c0_i32, %c0_i32_0, %c0_i32_1 : i32, i32, i32
  }
  func.func @transform_9(%arg0: i32, %arg1: i32) -> (i32, i32) {
    %c0_i32 = arith.constant 0 : i32
    %c0_i32_0 = arith.constant 0 : i32
    %c0_i32_1 = arith.constant 0 : i32
    return %c0_i32, %c0_i32_0 : i32, i32
  }
  func.func @transform_10(%arg0: i32, %arg1: i32) -> (i32, i32) {
    %c0_i32 = arith.constant 0 : i32
    %c0_i32_0 = arith.constant 0 : i32
    %c0_i32_1 = arith.constant 0 : i32
    return %c0_i32, %c0_i32_0 : i32, i32
  }
  func.func @transform_11(%arg0: i32, %arg1: i32) -> (i32, i32) {
    %c0_i32 = arith.constant 0 : i32
    %c0_i32_0 = arith.constant 0 : i32
    %c0_i32_1 = arith.constant 0 : i32
    return %c0_i32, %c0_i32_0 : i32, i32
  }
  func.func @transform_12(%arg0: i32, %arg1: i32) -> (i32, i32) {
    %c0_i32 = arith.constant 0 : i32
    %c0_i32_0 = arith.constant 0 : i32
    %c0_i32_1 = arith.constant 0 : i32
    return %c0_i32, %c0_i32_0 : i32, i32
  }
  func.func @transform_13(%arg0: i32, %arg1: i32) -> (i32, i32) {
    %c0_i32 = arith.constant 0 : i32
    %c0_i32_0 = arith.constant 0 : i32
    %c0_i32_1 = arith.constant 0 : i32
    return %c0_i32, %c0_i32_0 : i32, i32
  }
  func.func @transform_14(%arg0: i32, %arg1: i32) -> (i32, i32) {
    %c0_i32 = arith.constant 0 : i32
    %c0_i32_0 = arith.constant 0 : i32
    %c0_i32_1 = arith.constant 0 : i32
    return %c0_i32, %c0_i32_0 : i32, i32
  }
  func.func @transform_15(%arg0: i32, %arg1: i32) -> (i32, i32) {
    %c0_i32 = arith.constant 0 : i32
    %c0_i32_0 = arith.constant 0 : i32
    %c0_i32_1 = arith.constant 0 : i32
    return %c0_i32, %c0_i32_0 : i32, i32
  }
  func.func @transform_16(%arg0: i32, %arg1: i32) -> (i32, i32) {
    %c0_i32 = arith.constant 0 : i32
    %c0_i32_0 = arith.constant 0 : i32
    %c0_i32_1 = arith.constant 0 : i32
    return %c0_i32, %c0_i32_0 : i32, i32
  }
  func.func @transform_17(%arg0: i32, %arg1: i32) -> (i32, i32) {
    %c0_i32 = arith.constant 0 : i32
    %c0_i32_0 = arith.constant 0 : i32
    %c0_i32_1 = arith.constant 0 : i32
    return %c0_i32, %c0_i32_0 : i32, i32
  }
  func.func @transform_18(%arg0: i32, %arg1: i32) -> (i32, i32, i32) {
    %c0_i32 = arith.constant 0 : i32
    %c0_i32_0 = arith.constant 0 : i32
    return %arg0, %arg1, %c0_i32 : i32, i32, i32
  }
}

</mosaic_0001>

<bundles_post_ra>
// kernel: tpu_custom_call.1
= control target key start
LH: loop header
LB: loop body
LE: loop exit
PB: predicated region body
PF: predicated region fallthrough
CT: control target
= control target key end

     0   :  { %6 = vsyncpa [#allocation3], 0  ;;  %s441_s0 = inlined_call_operand.hbm [shape: f32[8,128], index: 0, kind: input, shape index: {}]   ;;  %s442_s1 = inlined_call_operand.hbm [shape: f32[16,128], index: 1, kind: output, shape index: {}]  }
   0x1   :  { %7 = vsyncpa [#allocation4], 0 }
   0x2   :  { %9 = vsyncpa [#allocation4 + $0x1], 0  ;;  %s357_s6 = smov 0   ;;  %s359_s7 = smov 0  }
   0x3   :  { %s361_s8 = smov 0   ;;  %s363_s9 = smov 0  }
   0x4 LB: > { %s378_s10 = sadd.s32 4294967295, %s344_s9   ;;  %s188_s11 = sadd.s32 4294967294, %s344_s9   ;;  %s344_s9 = sphi %s363_s9, %s448_s9   ;;  %s340_s8 = sphi %s361_s8, %s447_s8   ;;  %s336_s7 = sphi %s359_s7, %s446_s7   ;;  %s332_s6 = sphi %s357_s6, %s445_s6  }
   0x5   : > { %s382_s12 = sadd.s32 1, %s344_s9   ;;  %s43_s13 = sadd.s32 1, %s340_s8 }
   0x6   : > { %s40_s14 = ssub.s32 %s344_s9, %s382_s12  ;;  %p53_p0 = scmp.ne.s32.totalorder %s340_s8, %s336_s7 }
   0x7   : > { %p41_p1 = scmp.eq.s32.totalorder %s40_s14, 0  ;;  %p54_p2 = scmp.eq.s32.totalorder %s378_s10, 1 }
   0x8   : > { %p59_p3 = scmp.ne.s32.totalorder %s336_s7, %s332_s6  ;;  %p60_p4 = scmp.eq.s32.totalorder %s188_s11, 1 }
   0x9   : > { %s393_s15 = scalar_select %p41_p1, %s340_s8, %s43_s13  }
   0xa   : > { %p395_p5 = por %p54_p2, %p53_p0  ;;  %p399_p6 = por %p60_p4, %p59_p3 }
   0xb   : > { %p189_p7 = scmp.ge.s32.totalorder %s344_s9, 1  ;;  %p67_p8 = scmp.lt.s32.totalorder %s344_s9, 3 }
   0xc   : > { %p212_p9 = scmp.eq.s32.totalorder %s378_s10, 0  ;;  %s79_s20 = sshll.u32 %s441_s0, 4  ;;  %s80_s20 = int_to_ptr.hbm [resolvable:$true] %s79_s20 }
   0xd   : > { %p68_p10 = pnand %p189_p7, %p67_p8  ;;  %s346_s21 = smov [#allocation2]  }
   0xe   : > { %s81_s22 = sshll.u32 %s346_s21, 4  ;;  %s82_s22 = int_to_ptr.vmem [resolvable:$true] %s81_s22 }
   0xf   : > { %p204_p11 = pneg %p68_p10  ;;  %94 = sbr.rel (%p68_p10) target bundleno = 37 (0x25), region = 24 }
  0x11   : > { %p205_p12 = pnand %p212_p9, %p204_p11 }
  0x13   : > { %207 = dma.hbm_to_vmem [thread:$0]  (!%p205_p12), %s80_s20, 128, %s82_s22, [#allocation3]  }
  0x14   : > { %323 = dma.done.wait (%p212_p9), [#allocation3], 128  }
  0x15   : > { %325 = vsyncadd (%p212_p9), [#allocation3], 4294967168  ;;  %s107_s23 = sand.u32 1, %s336_s7   ;;  %s195_s24 = sshll.u32 %s378_s10, 3  ;;  %v110_v0 = vld [vmem:[#allocation2] sm:$0xff] }
  0x16   : > { %s193_s25 = sshll.u32 %s107_s23, 3  ;;  %s124_s28 = scalar_lea.hbm %s442_s1, %s195_s24  ;;  %v111_v1 = vmul.f32 2.0, %v110_v0 }
  0x17   : > { %s109_s29 = scalar_lea.vmem [#allocation5], %s193_s25  ;;  %s128_s2 = sshll.u32 %s124_s28, 4  ;;  %s129_s2 = int_to_ptr.hbm [resolvable:$true] %s128_s2 }
  0x18   : > { %s126_s30 = sshll.u32 %s109_s29, 4  ;;  %112 = vst [vmem:[%s109_s29] sm:$0xff] %v111_v1  ;;  %s114_s3 = scalar_lea.sflag [#allocation4], %s107_s23  ;;  %s127_s30 = int_to_ptr.vmem [resolvable:$true] %s126_s30 }
  0x19   : > { %s292_s4 = sshra.s32 %s129_s2, 4  ;;  %s298_s13 = scalar_lea.hbm %s442_s1, 16  ;;  %s293_s4 = int_to_ptr.hbm [resolvable:$true] %s292_s4 }
  0x1a   : > { %s294_s5 = scalar_lea.hbm %s293_s4, 8  ;;  %p299_p2 = scmp.lt.s32.totalorder %s293_s4, %s442_s1 }
  0x1b   : > { %p295_p13 = scmp.ne.s32.totalorder %s293_s4, %s294_s5  ;;  %p300_p3 = scmp.lt.s32.totalorder %s298_s13, %s294_s5 }
  0x1d   : > { %p296_p0 = pnand %p295_p13, %p395_p5  ;;  %p301_p4 = por %p300_p3, %p299_p2 }
  0x1f   : > { %p297_p1 = pneg %p296_p0 }
  0x21   : > { %p302_p7 = pnand %p301_p4, %p297_p1 }
  0x23   : > { %305 = shalt.err (!%p302_p7)
}
  0x24   : > { %202 = dma.vmem_to_hbm [thread:$0]  (%p395_p5), %s127_s30, 128, %s129_s2, %s114_s3  }
  0x25 PF: > { %p214_p8 = scmp.ge.s32.totalorder %s344_s9, 2  ;;  %s140_s19 = sand.u32 1, %s332_s6  }
  0x26   : > { %s141_s20 = scalar_lea.sflag [#allocation4], %s140_s19 }
  0x27   : > { %p209_p9 = pnand %p214_p8, %p399_p6 }
  0x29   : > { %p210_p10 = pneg %p209_p9 }
  0x2b   : > { %327 = dma.done.wait (%p210_p10), %s141_s20, 128  }
  0x2c   : > { %329 = vsyncadd (%p210_p10), %s141_s20, 4294967168  ;;  %p12_p11 = scmp.ge.s32.totalorder %s382_s12, 4   ;;  %s445_s6 = smov %s336_s7 }
  0x2d   : > { %s446_s7 = smov %s340_s8  ;;  %s447_s8 = smov %s393_s15 }
  0x2e   : > { %s448_s9 = smov %s382_s12  ;;  %14 = sbr.rel (!%p12_p11) target bundleno = 4 (0x4), region = 61 }
  0x33   :  { %147 = vsyncpa [#allocation3], 1 }
  0x34   :  { %149 = vsyncpa [#allocation3 + $0x1], 1 }
  0x35   :  { %150 = vsyncpa [#allocation4], 1 }
  0x36   :  { %152 = vsyncpa [#allocation4 + $0x1], 1 }

// kernel: tpu_custom_call.1
= control target key start
LH: loop header
LB: loop body
LE: loop exit
PB: predicated region body
PF: predicated region fallthrough
CT: control target
= control target key end

     0   :  { %s2427_s0 = inlined_call_operand.vmem [shape: bf16[2,8,32], index: 0, kind: input, shape index: {}]   ;;  %s2428_s1 = inlined_call_operand.vmem [shape: f32[2,1,8], index: 1, kind: input, shape index: {}]   ;;  %s2429_s2 = inlined_call_operand.vmem [shape: bf16[4,32,8], index: 2, kind: input, shape index: {}]   ;;  %s2430_s3 = inlined_call_operand.vmem [shape: f32[4,1,8], index: 3, kind: input, shape index: {}]   ;;  %s2431_s4 = inlined_call_operand.vmem [shape: bf16[4,32,8], index: 4, kind: input, shape index: {}]   ;;  %s2432_s5 = inlined_call_operand.vmem [shape: f32[4,1,8], index: 5, kind: input, shape index: {}]   ;;  %s2433_s6 = inlined_call_operand.vmem [shape: bf16[4,32,8], index: 6, kind: input, shape index: {}]   ;;  %s2434_s7 = inlined_call_operand.vmem [shape: f32[4,1,8], index: 7, kind: input, shape index: {}]   ;;  %s2435_s8 = inlined_call_operand.vmem [shape: bf16[4,8,32], index: 8, kind: input, shape index: {}]   ;;  %s2436_s9 = inlined_call_operand.vmem [shape: f32[1,32], index: 9, kind: input, shape index: {}]   ;;  %s2437_s10 = inlined_call_operand.vmem [shape: f32[1,32], index: 10, kind: input, shape index: {}]   ;;  %s2438_s11 = inlined_call_operand.vmem [shape: f32[1,32], index: 11, kind: input, shape index: {}]   ;;  %s2439_s12 = inlined_call_operand.vmem [shape: bf16[32,64], index: 12, kind: input, shape index: {}]   ;;  %s2440_s13 = inlined_call_operand.vmem [shape: f32[1,64], index: 13, kind: input, shape index: {}]   ;;  %s2441_s14 = inlined_call_operand.vmem [shape: bf16[64,32], index: 14, kind: input, shape index: {}]   ;;  %s2442_s15 = inlined_call_operand.vmem [shape: f32[1,32], index: 15, kind: input, shape index: {}]   ;;  %s2443_s16 = inlined_call_operand.vmem [shape: f32[1,32], index: 16, kind: input, shape index: {}]   ;;  %s2444_s17 = inlined_call_operand.vmem [shape: f32[1,32], index: 17, kind: input, shape index: {}]   ;;  %s2445_s18 = inlined_call_operand.hbm [shape: f32[2,8,32], index: 18, kind: output, shape index: {}]  }
   0x1   :  { %2456 = sst [smem:[#allocation15_spill]] %s2427_s0 }
   0x2   :  { %2457 = sst [smem:[#allocation16_spill]] %s2428_s1 }
   0x3   :  { %2458 = sst [smem:[#allocation17_spill]] %s2429_s2 }
   0x4   :  { %2459 = sst [smem:[#allocation18_spill]] %s2430_s3 }
   0x5   :  { %2460 = sst [smem:[#allocation19_spill]] %s2444_s17 }
   0x6   :  { %23 = vsyncpa [#allocation5], 0 }
   0x7   :  { %25 = vsyncpa [#allocation5 + $0x1], 0  ;;  %s2085_s27 = smov 0   ;;  %s2087_s28 = smov 0  }
   0x8   :  { %s2089_s29 = smov 0   ;;  %s2091_s30 = smov 0  }
   0x9   :  { %s2093_s0 = smov 0   ;;  %s2095_s19 = smov 0  }
   0xa LB: > { %2461 = sst [smem:[#allocation7_spill]] %s1967_s27  ;;  %s1623_s1 = sadd.s32 4294967295, %s1987_s19   ;;  %s1987_s19 = sphi %s2095_s19, %s31_s19   ;;  %s1983_s0 = sphi %s2093_s0, %s2483_s0   ;;  %s1979_s30 = sphi %s2091_s30, %s2482_s30   ;;  %s1975_s29 = sphi %s2089_s29, %s2481_s29   ;;  %s1971_s28 = sphi %s2087_s28, %s2485_s28   ;;  %s1967_s27 = sphi %s2085_s27, %s2484_s27  }
   0xb   : > { %2462 = sst [smem:[#allocation8_spill]] %s1975_s29  ;;  %s1624_s20 = sadd.s32 4294967294, %s1987_s19  }
   0xc   : > { %2463 = sst [smem:[#allocation9_spill]] %s1983_s0  ;;  %s43_s21 = sadd.s32 1, %s1983_s0 }
   0xd   : > { %2464 = sst [smem:[#allocation10_spill]] %s1987_s19  ;;  %s440_s22 = sadd.s32 1, %s1975_s29 }
   0xe   : > { %p45_p0 = scmp.ge.s32.totalorder %s43_s21, 2  ;;  %p450_p1 = scmp.ne.s32.totalorder %s1975_s29, %s1971_s28 }
   0xf   : > { %p451_p2 = scmp.eq.s32.totalorder %s1623_s1, 1  ;;  %p456_p3 = scmp.ne.s32.totalorder %s1971_s28, %s1967_s27 }
  0x10   : > { %s2487_s21 = smov (%p45_p0, %s43_s21), 0  ;;  %p457_p5 = scmp.eq.s32.totalorder %s1624_s20, 1 }
  0x11   : > { %2465 = sst [smem:[#allocation11_spill]] %s2487_s21  ;;  %p2125_p4 = por %p451_p2, %p450_p1 }
  0x12   : > { %s435_s23 = ssub.s32 %s1983_s0, %s2487_s21  ;;  %p1627_p6 = scmp.ge.s32.totalorder %s1987_s19, 1 }
  0x13   : > { %s2466_s2 = scalar_select %p2125_p4, 1, 0 }
  0x14   : > { %p438_p7 = scmp.eq.s32.totalorder %s435_s23, 0  ;;  %p2132_p8 = por %p457_p5, %p456_p3 }
  0x15   : > { %2467 = sst [smem:[#allocation12_spill]] %s2466_s2  ;;  %p536_p9 = scmp.lt.s32.totalorder %s1987_s19, 3 }
  0x16   : > { %s2468_s24 = scalar_select %p2132_p8, 1, 0 }
  0x17   : > { %s2138_s25 = scalar_select %p438_p7, %s1975_s29, %s440_s22  }
  0x18   : > { %2469 = sst [smem:[#allocation13_spill]] %s2468_s24  ;;  %p537_p10 = pnand %p1627_p6, %p536_p9 }
  0x19   : > { %2470 = sst [smem:[#allocation14_spill]] %s2138_s25  ;;  %p592_p11 = scmp.lt.s32.totalorder (!%p537_p10), %s1979_s30, 1 }
  0x1a   : > { %540 = sbr.rel (%p537_p10) target bundleno = 1577 (0x629), region = 92  ;;  %s2471_s17 = sld [smem:[#allocation15_spill]] (!%p537_p10) }
  0x1b   : > { %s2472_s22 = sld [smem:[#allocation17_spill]] (!%p537_p10)  ;;  %s589_s21 = sand.u32 (!%p537_p10), 1, %s1971_s28  }
  0x1c   : > { %s2473_s3 = sld [smem:[#allocation18_spill]] (!%p537_p10)  ;;  %s1628_s20 = sshll.u32 (!%p537_p10), %s589_s21, 3 }
  0x1d   : > { %s2474_s26 = sld [smem:[#allocation16_spill]] (!%p537_p10)  ;;  %s1777_s23 = sshll.u32 (!%p537_p10), %s1979_s30, 3 }
  0x1e   : > { %s2476_s27 = sld [smem:[#allocation19_spill]] (!%p537_p10)  ;;  %s591_s24 = scalar_lea.vmem (!%p537_p10), [#allocation4], %s1628_s20 }
  0x1f   : > { %v1781_v0 = vld [vmem:[%s2431_s4 + $0x8] sm:$0xff]  ;;  %v1787_v2 = vld [vmem:[%s2431_s4 + $0x38] sm:$0xff]  ;;  %v1780_v3 = vld [vmem:[%s2431_s4] sm:$0xff]  ;;  %s2157_s1 = scalar_select %p592_p11, %s1979_s30, 1  ;;  %vm649_vm0 = vcmask 261120   ;;  %vm877_vm1 = vcmask 60416  }
  0x20   : > { %v1785_v1 = vld [vmem:[%s2431_s4 + $0x28] sm:$0xff]  ;;  %659 = vmatpush.bf16.msra.mxu0 %v1781_v0  ;;  %v1784_v4 = vld [vmem:[%s2431_s4 + $0x20] sm:$0xff]  ;;  %v1783_v5 = vld [vmem:[%s2431_s4 + $0x18] sm:$0xff]  ;;  %734 = vmatpush.bf16.msra.mxu3 %v1787_v2  ;;  %vm1044_vm2 = vcmask 64512   ;;  %vm1175_vm3 = vcmask 1043456   ;;  %vm1476_vm8 = vcmask 523264  }
  0x21   : > { %709 = vmatpush.bf16.msra.mxu2 %v1785_v1  ;;  %v1786_v6 = vld [vmem:[%s2431_s4 + $0x30] sm:$0xff]  ;;  %v1793_v7 = vld [vmem:[%s2433_s6 + $0x28] sm:$0xff]  ;;  %s1629_s0 = sshll.u32 %s2157_s1, 2  ;;  %684 = vmatpush.bf16.msra.mxu1 %v1783_v5  ;;  %v1795_v9 = vld [vmem:[%s2433_s6 + $0x38] sm:$0xff]  ;;  %s1541_s30 = sshll.u32 %s591_s24, 4  ;;  %s1542_s30 = int_to_ptr.vmem [resolvable:$true] %s1541_s30 }
  0x22   : > { %v1782_v8 = vld [vmem:[%s2431_s4 + $0x10] sm:$0xff]  ;;  %s2178_s2 = scalar_lea.vmem %s2471_s17, %s1629_s0  ;;  %v1792_v11 = vld [vmem:[%s2433_s6 + $0x20] sm:$0xff]  ;;  %v1789_v12 = vld [vmem:[%s2433_s6 + $0x8] sm:$0xff]  ;;  %s1528_s19 = scalar_lea.sflag [#allocation5], %s589_s21 }
  0x23   : > { %v604_v10 = vld [vmem:[%s2178_s2] sm:$0xf]  ;;  %v1794_v13 = vld [vmem:[%s2433_s6 + $0x30] sm:$0xff]  ;;  %v1801_v14 = vld [vmem:[%s2472_s22 + $0x28] sm:$0xff]  ;;  %s598_s29 = scalar_lea.vmem %s2474_s26, %s2157_s1  ;;  %s1539_s26 = scalar_lea.hbm %s2445_s18, %s1777_s23 }
  0x24   : > { %660 = vmatpush.bf16.msra.mxu0 %v1780_v3  ;;  %735 = vmatpush.bf16.msra.mxu3 %v1786_v6  ;;  %v1791_v15 = vld [vmem:[%s2433_s6 + $0x18] sm:$0xff]  ;;  %v1788_v16 = vld [vmem:[%s2433_s6] sm:$0xff]  ;;  %v1797_v19 = vld [vmem:[%s2472_s22 + $0x8] sm:$0xff]  ;;  %s1929_s20 = scalar_lea.hbm %s2445_s18, 16 }
  0x25   : > { %710 = vmatpush.bf16.msra.mxu2 %v1784_v4  ;;  %685 = vmatpush.bf16.msra.mxu1 %v1782_v8  ;;  %v1803_v17 = vld [vmem:[%s2472_s22 + $0x38] sm:$0xff]  ;;  %v1800_v18 = vld [vmem:[%s2472_s22 + $0x20] sm:$0xff]  ;;  %v1790_v20 = vld [vmem:[%s2433_s6 + $0x10] sm:$0xff] }
  0x26   : > { %v1802_v21 = vld [vmem:[%s2472_s22 + $0x30] sm:$0xff]  ;;  %v1799_v22 = vld [vmem:[%s2472_s22 + $0x18] sm:$0xff]  ;;  %v1796_v23 = vld [vmem:[%s2472_s22] sm:$0xff] }
  0x27   : > { %1638 = vmatmul.msk.bf16.vlgmr.msra.gmra.mxu0 %vm649_vm0, %v604_v10  ;;  %1665 = vmatmul.msk.bf16.vlgmr.msra.gmra.mxu3 %vm649_vm0, %v604_v10  ;;  %v1798_v24 = vld [vmem:[%s2472_s22 + $0x10] sm:$0xff]  ;;  %v2232_v25 = vld [vmem:[%s2178_s2] sm:$0xf] }
  0x28   : > { %866 = vmatpush.bf16.msrb.mxu3 %v1795_v9  ;;  %1656 = vmatmul.msk.bf16.vlgmr.msra.gmra.mxu2 %vm649_vm0, %v604_v10  ;;  %v1866_v26 = vld [vmem:[%s2432_s5] ss:$0 sm:$0xff]  ;;  %v1869_v27 = vld [vmem:[%s2432_s5 + $0x1] ss:$0 sm:$0xff]  ;;  %v1867_v32 = vld [vmem:[%s2432_s5 + $0x2] ss:$0 sm:$0xff] }
  0x29   : > { %841 = vmatpush.bf16.msrb.mxu2 %v1793_v7  ;;  %791 = vmatpush.bf16.msrb.mxu0 %v1789_v12  ;;  %v1868_v34 = vld [vmem:[%s2432_s5 + $0x3] ss:$0 sm:$0xff]  ;;  %v1870_v45 = vld [vmem:[%s2434_s7] ss:$0 sm:$0xff]  ;;  %v1873_v50 = vld [vmem:[%s2434_s7 + $0x1] ss:$0 sm:$0xff] }
  0x2a   : > { %1647 = vmatmul.msk.bf16.vlgmr.msra.gmra.mxu1 %vm649_vm0, %v604_v10  ;;  %v1871_v58 = vld [vmem:[%s2434_s7 + $0x2] ss:$0 sm:$0xff]  ;;  %v1872_v61 = vld [vmem:[%s2434_s7 + $0x3] ss:$0 sm:$0xff]  ;;  %v1874_v9 = vld [vmem:[%s2473_s3] ss:$0 sm:$0xff] }
  0x2b   : > { %816 = vmatpush.bf16.msrb.mxu1 %v1791_v15 }
  0x2c   : > { %867 = vmatpush.bf16.msrb.mxu3 %v1794_v13 }
  0x2d   : > { %842 = vmatpush.bf16.msrb.mxu2 %v1792_v11  ;;  %792 = vmatpush.bf16.msrb.mxu0 %v1788_v16 }
  0x2f   : > { %817 = vmatpush.bf16.msrb.mxu1 %v1790_v20 }
  0x30   : > { %1026 = vmatpush.bf16.msra.mxu3 %v1803_v17 }
  0x31   : > { %1001 = vmatpush.bf16.msra.mxu2 %v1801_v14  ;;  %951 = vmatpush.bf16.msra.mxu0 %v1797_v19  ;;  %v1877_v14 = vld [vmem:[%s2473_s3 + $0x1] ss:$0 sm:$0xff] }
  0x33   : > { %976 = vmatpush.bf16.msra.mxu1 %v1799_v22  ;;  %v1875_v22 = vld [vmem:[%s2473_s3 + $0x2] ss:$0 sm:$0xff] }
  0x34   : > { %1027 = vmatpush.bf16.msra.mxu3 %v1802_v21 }
  0x35   : > { %1002 = vmatpush.bf16.msra.mxu2 %v1800_v18  ;;  %952 = vmatpush.bf16.msra.mxu0 %v1796_v23 }
  0x37   : > { %977 = vmatpush.bf16.msra.mxu1 %v1798_v24  ;;  %1674 = vmatmul.msk.bf16.vlgmr.msrb.gmra.mxu0 %vm649_vm0, %v604_v10 }
  0x38   : > { %1692 = vmatmul.msk.bf16.vlgmr.msrb.gmra.mxu2 %vm649_vm0, %v604_v10  ;;  %1701 = vmatmul.msk.bf16.vlgmr.msrb.gmra.mxu3 %vm649_vm0, %v604_v10 }
  0x3a   : > { %1683 = vmatmul.msk.bf16.vlgmr.msrb.gmra.mxu1 %vm649_vm0, %v604_v10 }
  0x47   : > { %1710 = vmatmul.msk.bf16.vlgmr.msra.gmra.mxu0 %vm649_vm0, %v2232_v25 }
  0x48   : > { %1728 = vmatmul.msk.bf16.vlgmr.msra.gmra.mxu2 %vm649_vm0, %v2232_v25  ;;  %1737 = vmatmul.msk.bf16.vlgmr.msra.gmra.mxu3 %vm649_vm0, %v2232_v25 }
  0x4a   : > { %1719 = vmatmul.msk.bf16.vlgmr.msra.gmra.mxu1 %vm649_vm0, %v2232_v25 }
  0xa4   : > { %v662_v28 = vpop.f32.mrf.mxu0 }
  0xa5   : > { %v663_v29 = vadd.f32 %v1866_v26, %v662_v28  ;;  %v1876_v26 = vld [vmem:[%s2473_s3 + $0x3] ss:$0 sm:$0xff]  ;;  %s1543_s3 = sshll.u32 %s1539_s26, 4  ;;  %s1544_s3 = int_to_ptr.hbm [resolvable:$true] %s1543_s3 }
  0xa6   : > { %s1923_s25 = sshra.s32 %s1544_s3, 4  ;;  %s1924_s25 = int_to_ptr.hbm [resolvable:$true] %s1923_s25 }
  0xa7   : > { %v687_v30 = vpop.f32.mrf.mxu1  ;;  %v873_v31 = vpack.c.bf16 %v663_v29, %v663_v29  ;;  %s1925_s23 = scalar_lea.hbm %s1924_s25, 8  ;;  %p1930_p1 = scmp.lt.s32.totalorder %s1924_s25, %s2445_s18 }
  0xa8   : > { %v688_v33 = vadd.f32 %v1869_v27, %v687_v30  ;;  %p1926_p12 = scmp.ne.s32.totalorder %s1924_s25, %s1925_s23  ;;  %p1931_p2 = scmp.lt.s32.totalorder %s1929_s20, %s1925_s23 }
  0xa9   : > { %878 = vst.msk [vmem:[#allocation2] sm:$0xf] %vm877_vm1, %v873_v31 }
  0xaa   : > { %v874_v35 = vpack.c.bf16 %v688_v33, %v688_v33  ;;  %v737_v38 = vpop.f32.mrf.mxu3  ;;  %p1927_p13 = pnand %p1926_p12, %p2125_p4  ;;  %p1932_p3 = por %p1931_p2, %p1930_p1 }
  0xab   : > { %v712_v36 = vpop.f32.mrf.mxu2  ;;  %v738_v39 = vadd.f32 %v1868_v34, %v737_v38 }
  0xac   : > { %v713_v37 = vadd.f32 %v1867_v32, %v712_v36  ;;  %879 = vst.msk [vmem:[#allocation2 + $0x4] sm:$0xf] %vm877_vm1, %v874_v35  ;;  %v664_v40 = vpop.f32.mrf.mxu0  ;;  %p1928_p0 = pneg %p1927_p13 }
  0xad   : > { %v876_v42 = vpack.c.bf16 %v738_v39, %v738_v39  ;;  %v1033_v39 = vld [vmem:[%s598_s29] sm:$0x1] }
  0xae   : > { %v875_v41 = vpack.c.bf16 %v713_v37, %v713_v37  ;;  %v1034_v40 = vsub.f32 1.0, %v1033_v39  ;;  %p1933_p5 = pnand %p1932_p3, %p1928_p0 }
  0xaf   : > { %v689_v43 = vpop.f32.mrf.mxu1  ;;  %881 = vst.msk [vmem:[#allocation2 + $0xc] sm:$0xf] %vm877_vm1, %v876_v42 }
  0xb0   : > { %880 = vst.msk [vmem:[#allocation2 + $0x8] sm:$0xf] %vm877_vm1, %v875_v41  ;;  %v1040_v44 = vld [vmem:[#allocation2] sm:$0xf]  ;;  %v1035_v41 = vmul.f32 1e+30, %v1034_v40 }
  0xb1   : > { %v1049_v46 = vsel %vm1044_vm2, %v1040_v44, 0 }
  0xb2   : > { %1058 = vmatpush.bf16.xpose.msrb.mxu0 %v1049_v46  ;;  %v739_v49 = vpop.f32.mrf.mxu3  ;;  %v1122_v42 = vperm.slane %v1035_v41, 0 }
  0xb3   : > { %v714_v47 = vpop.f32.mrf.mxu2  ;;  %v1041_v48 = vld [vmem:[#allocation2 + $0x4] sm:$0xf] }
  0xb4   : > { %v1068_v51 = vsel %vm1044_vm2, %v1041_v48, 0  ;;  %v794_v52 = vpop.f32.mrf.mxu0 }
  0xb5   : > { %1077 = vmatpush.bf16.xpose.msrb.mxu1 %v1068_v51  ;;  %v795_v53 = vadd.f32 %v1870_v45, %v794_v52 }
  0xb6   : > { %v1043_v60 = vld [vmem:[#allocation2 + $0xc] sm:$0xf] }
  0xb7   : > { %v1042_v54 = vld [vmem:[#allocation2 + $0x8] sm:$0xf]  ;;  %v819_v55 = vpop.f32.mrf.mxu1  ;;  %v882_v56 = vpack.c.bf16 %v795_v53, %v795_v53  ;;  %v1106_v62 = vsel %vm1044_vm2, %v1043_v60, 0 }
  0xb8   : > { %v1087_v57 = vsel %vm1044_vm2, %v1042_v54, 0  ;;  %v820_v59 = vadd.f32 %v1873_v50, %v819_v55  ;;  %1115 = vmatpush.bf16.xpose.msrb.mxu3 %v1106_v62 }
  0xb9   : > { %1096 = vmatpush.bf16.xpose.msrb.mxu2 %v1087_v57  ;;  %886 = vst.msk [vmem:[#allocation3] sm:$0xf] %vm877_vm1, %v882_v56 }
  0xba   : > { %v883_v63 = vpack.c.bf16 %v820_v59, %v820_v59 }
  0xbb   : > { %v844_v0 = vpop.f32.mrf.mxu2  ;;  %v869_v2 = vpop.f32.mrf.mxu3 }
  0xbc   : > { %v845_v1 = vadd.f32 %v1871_v58, %v844_v0  ;;  %887 = vst.msk [vmem:[#allocation3 + $0x4] sm:$0xf] %vm877_vm1, %v883_v63  ;;  %v870_v3 = vadd.f32 %v1872_v61, %v869_v2  ;;  %v796_v4 = vpop.f32.mrf.mxu0 }
  0xbe   : > { %v884_v5 = vpack.c.bf16 %v845_v1, %v845_v1  ;;  %v885_v6 = vpack.c.bf16 %v870_v3, %v870_v3 }
  0xbf   : > { %v821_v7 = vpop.f32.mrf.mxu1 }
  0xc0   : > { %888 = vst.msk [vmem:[#allocation3 + $0x8] sm:$0xf] %vm877_vm1, %v884_v5  ;;  %v1168_v8 = vld [vmem:[#allocation3] sm:$0xf] }
  0xc1   : > { %889 = vst.msk [vmem:[#allocation3 + $0xc] sm:$0xf] %vm877_vm1, %v885_v6  ;;  %v1177_v10 = vsel %vm1175_vm3, %v1168_v8, 0 }
  0xc2   : > { %1186 = vmatpush.bf16.msra.mxu0 %v1177_v10 }
  0xc3   : > { %v846_v11 = vpop.f32.mrf.mxu2  ;;  %v1169_v12 = vld [vmem:[#allocation3 + $0x4] sm:$0xf]  ;;  %v871_v13 = vpop.f32.mrf.mxu3 }
  0xc4   : > { %v1196_v15 = vsel %vm1175_vm3, %v1169_v12, 0  ;;  %v954_v16 = vpop.f32.mrf.mxu0 }
  0xc5   : > { %1205 = vmatpush.bf16.msra.mxu1 %v1196_v15  ;;  %v955_v17 = vadd.f32 %v1874_v9, %v954_v16 }
  0xc7   : > { %v1170_v18 = vld [vmem:[#allocation3 + $0x8] sm:$0xf]  ;;  %v979_v19 = vpop.f32.mrf.mxu1  ;;  %v1036_v20 = vpack.c.bf16 %v955_v17, %v955_v17 }
  0xc8   : > { %v1215_v21 = vsel %vm1175_vm3, %v1170_v18, 0  ;;  %v980_v23 = vadd.f32 %v1877_v14, %v979_v19  ;;  %v1171_v24 = vld [vmem:[#allocation3 + $0xc] sm:$0xf]  ;;  %v1261_v19 = vld [vmem:[%s2435_s8] sm:$0xf] }
  0xc9   : > { %1224 = vmatpush.bf16.msra.mxu2 %v1215_v21  ;;  %v1234_v27 = vsel %vm1175_vm3, %v1171_v24, 0  ;;  %1738 = vmatmul.msk.bf16.vlgmr.msrb.gmra.mxu0 %vm1044_vm2, %v1036_v20  ;;  %v1269_v20 = vsel %vm1175_vm3, %v1261_v19, 0  ;;  %v1262_v21 = vld [vmem:[%s2435_s8 + $0x4] sm:$0xf]  ;;  %v1264_v24 = vld [vmem:[%s2435_s8 + $0xc] sm:$0xf] }
  0xca   : > { %v1037_v28 = vpack.c.bf16 %v980_v23, %v980_v23  ;;  %1243 = vmatpush.bf16.msra.mxu3 %v1234_v27  ;;  %1278 = vmatpush.bf16.msrb.mxu0 %v1269_v20  ;;  %v1263_v23 = vld [vmem:[%s2435_s8 + $0x8] sm:$0xf]  ;;  %v1326_v27 = vsel %vm1175_vm3, %v1264_v24, 0  ;;  %v1804_v20 = vld [vmem:[%s2439_s12] sm:$0xff] }
  0xcb   : > { %v1004_v29 = vpop.f32.mrf.mxu2  ;;  %v1029_v31 = vpop.f32.mrf.mxu3  ;;  %v1805_v19 = vld [vmem:[%s2439_s12 + $0x8] sm:$0xff] }
  0xcc   : > { %v1005_v30 = vadd.f32 %v1875_v22, %v1004_v29  ;;  %1739 = vmatmul.msk.bf16.vlgmr.msrb.gmra.mxu1 %vm1044_vm2, %v1037_v28  ;;  %v1030_v32 = vadd.f32 %v1876_v26, %v1029_v31  ;;  %v956_v33 = vpop.f32.mrf.mxu0  ;;  %v1288_v22 = vsel %vm1175_vm3, %v1262_v21, 0  ;;  %v1307_v26 = vsel %vm1175_vm3, %v1263_v23, 0 }
  0xcd   : > { %1297 = vmatpush.bf16.msrb.mxu1 %v1288_v22 }
  0xce   : > { %v1038_v34 = vpack.c.bf16 %v1005_v30, %v1005_v30  ;;  %v1039_v35 = vpack.c.bf16 %v1030_v32, %v1030_v32 }
  0xcf   : > { %v981_v36 = vpop.f32.mrf.mxu1 }
  0xd0   : > { %1740 = vmatmul.msk.bf16.vlgmr.msrb.gmra.mxu2 %vm1044_vm2, %v1038_v34  ;;  %1741 = vmatmul.msk.bf16.vlgmr.msrb.gmra.mxu3 %vm1044_vm2, %v1039_v35 }
  0xd1   : > { %1316 = vmatpush.bf16.msrb.mxu2 %v1307_v26  ;;  %1335 = vmatpush.bf16.msrb.mxu3 %v1326_v27 }
  0xd3   : > { %v1006_v37 = vpop.f32.mrf.mxu2  ;;  %v1031_v38 = vpop.f32.mrf.mxu3 }
 0x146   : > { %v1060_v43 = vpop.f32.mrf.mxu0 }
 0x147   : > { %v1124_v44 = vsub.f32 %v1060_v43, %v1122_v42 }
 0x149   : > { %v1079_v45 = vpop.f32.mrf.mxu1  ;;  %v1128_v46 = vsel %vm1044_vm2, %v1124_v44, -inf }
 0x14a   : > { %1129 = vmax.xlane.f32.xlu1 %v1128_v46  ;;  %v1125_v47 = vsub.f32 %v1079_v45, %v1122_v42 }
 0x14c   : > { %v1131_v49 = vsel %vm1044_vm2, %v1125_v47, -inf }
 0x14e   : > { %v1062_v48 = vpop.f32.mrf.mxu0 }
 0x151   : > { %v1081_v50 = vpop.f32.mrf.mxu1 }
 0x152   : > { %1132 = vmax.xlane.f32.xlu1 %v1131_v49 }
 0x153   : > { %v1098_v51 = vpop.f32.mrf.mxu2  ;;  %v1117_v53 = vpop.f32.mrf.mxu3 }
 0x154   : > { %v1126_v52 = vsub.f32 %v1098_v51, %v1122_v42  ;;  %v1127_v55 = vsub.f32 %v1117_v53, %v1122_v42 }
 0x156   : > { %v1134_v54 = vsel %vm1044_vm2, %v1126_v52, -inf  ;;  %v1137_v58 = vsel %vm1044_vm2, %v1127_v55, -inf }
 0x157   : > { %1135 = vmax.xlane.f32.xlu0 %v1134_v54 }
 0x15b   : > { %v1100_v56 = vpop.f32.mrf.mxu2  ;;  %v1119_v57 = vpop.f32.mrf.mxu3 }
 0x15f   : > { %1138 = vmax.xlane.f32.xlu0 %v1137_v58 }
 0x1bd   : > { %v1130_v59 = vpop.xlane.xlu1 %1129 }
 0x1be   : > { %v1140_v60 = vsub.f32 %v1124_v44, %v1130_v59 }
 0x1c0   : > { %v1144_v61 = vmul.f32 1.442695, %v1140_v60 }
 0x1c2   : > { %1885 = vpow2.f32 %v1144_v61 }
 0x1c5   : > { %v1133_v62 = vpop.xlane.xlu1 %1132 }
 0x1c6   : > { %v1141_v63 = vsub.f32 %v1125_v47, %v1133_v62 }
 0x1c8   : > { %v1886_v0 = vpop.eup %1885  ;;  %v1146_v1 = vmul.f32 1.442695, %v1141_v63 }
 0x1c9   : > { %v1164_v2 = vpack.c.bf16 %v1886_v0, %v1886_v0  ;;  %v1152_v4 = vsel %vm1044_vm2, %v1886_v0, 0.0  ;;  %v1878_v0 = vld [vmem:[%s2436_s9] ss:$0 sm:$0xff] }
 0x1ca   : > { %v1136_v3 = vpop.xlane.xlu0 %1135  ;;  %1887 = vpow2.f32 %v1146_v1  ;;  %1153 = vadd.xlane.f32.xlu0 %v1152_v4 }
 0x1cb   : > { %v1142_v5 = vsub.f32 %v1126_v52, %v1136_v3  ;;  %1742 = vmatmul.msk.bf16.vlgmr.msra.gmra.mxu0 %vm1044_vm2, %v1164_v2  ;;  %v896_v3 = vunpack.c.l.bf16 %v2232_v25 }
 0x1cc   : > { %1423 = vmatpush.bf16.msra.mxu0 %v1805_v19 }
 0x1cd   : > { %v1148_v6 = vmul.f32 1.442695, %v1142_v5 }
 0x1cf   : > { %1889 = vpow2.f32 %v1148_v6 }
 0x1d0   : > { %v1888_v7 = vpop.eup %1887  ;;  %1424 = vmatpush.bf16.msra.mxu0 %v1804_v20 }
 0x1d1   : > { %v1165_v8 = vpack.c.bf16 %v1888_v7, %v1888_v7  ;;  %v1155_v10 = vsel %vm1044_vm2, %v1888_v7, 0.0 }
 0x1d2   : > { %v1139_v9 = vpop.xlane.xlu0 %1138  ;;  %1156 = vadd.xlane.f32.xlu1 %v1155_v10 }
 0x1d3   : > { %v1143_v11 = vsub.f32 %v1127_v55, %v1139_v9  ;;  %1743 = vmatmul.msk.bf16.vlgmr.msra.gmra.mxu1 %vm1044_vm2, %v1165_v8  ;;  %v1989_v8 = vmov 32.0  }
 0x1d5   : > { %v1890_v12 = vpop.eup %1889  ;;  %v1150_v13 = vmul.f32 1.442695, %v1143_v11 }
 0x1d6   : > { %v1166_v14 = vpack.c.bf16 %v1890_v12, %v1890_v12  ;;  %v1158_v15 = vsel %vm1044_vm2, %v1890_v12, 0.0 }
 0x1d7   : > { %1891 = vpow2.f32 %v1150_v13  ;;  %1159 = vadd.xlane.f32.xlu2 %v1158_v15 }
 0x1d8   : > { %1744 = vmatmul.msk.bf16.vlgmr.msra.gmra.mxu2 %vm1044_vm2, %v1166_v14 }
 0x1dd   : > { %v1892_v16 = vpop.eup %1891 }
 0x1de   : > { %v1167_v17 = vpack.c.bf16 %v1892_v16, %v1892_v16  ;;  %v1161_v18 = vsel %vm1044_vm2, %v1892_v16, 0.0 }
 0x1df   : > { %1162 = vadd.xlane.f32.xlu2 %v1161_v18 }
 0x1e0   : > { %1745 = vmatmul.msk.bf16.vlgmr.msra.gmra.mxu3 %vm1044_vm2, %v1167_v17 }
 0x23d   : > { %v1154_v28 = vpop.xlane.xlu0 %1153 }
 0x23e   : > { %1893 = vrcp.f32 %v1154_v28 }
 0x244   : > { %v1894_v30 = vpop.eup %1893 }
 0x245   : > { %v1157_v29 = vpop.xlane.xlu1 %1156 }
 0x246   : > { %1895 = vrcp.f32 %v1157_v29 }
 0x248   : > { %v1188_v31 = vpop.f32.mrf.mxu0 }
 0x249   : > { %v1253_v32 = vmul.f32 %v1894_v30, %v1188_v31  ;;  %v1879_v31 = vld [vmem:[%s2437_s10] ss:$0 sm:$0xff] }
 0x24a   : > { %v1160_v34 = vpop.xlane.xlu2 %1159 }
 0x24b   : > { %v1257_v33 = vpack.c.bf16 %v1253_v32, %v1253_v32  ;;  %1897 = vrcp.f32 %v1160_v34 }
 0x24c   : > { %v1896_v35 = vpop.eup %1895 }
 0x24d   : > { %1746 = vmatmul.msk.bf16.vlgmr.msrb.gmra.mxu0 %vm1044_vm2, %v1257_v33  ;;  %v1880_v33 = vld [vmem:[%s2438_s11] ss:$0 sm:$0xff] }
 0x250   : > { %v1190_v36 = vpop.f32.mrf.mxu0  ;;  %v1207_v37 = vpop.f32.mrf.mxu1 }
 0x251   : > { %v1254_v38 = vmul.f32 %v1896_v35, %v1207_v37  ;;  %v1898_v42 = vpop.eup %1897 }
 0x252   : > { %v1163_v41 = vpop.xlane.xlu2 %1162 }
 0x253   : > { %v1258_v39 = vpack.c.bf16 %v1254_v38, %v1254_v38  ;;  %1899 = vrcp.f32 %v1163_v41  ;;  %v1809_v38 = vld [vmem:[%s2441_s14 + $0x18] sm:$0xff]  ;;  %v1806_v41 = vld [vmem:[%s2441_s14] sm:$0xff] }
 0x254   : > { %1901 = vrcp.f32 %v1989_v8  ;;  %1484 = vmatpush.bf16.msra.mxu1 %v1809_v38 }
 0x255   : > { %1747 = vmatmul.msk.bf16.vlgmr.msrb.gmra.mxu1 %vm1044_vm2, %v1258_v39  ;;  %v1808_v39 = vld [vmem:[%s2441_s14 + $0x10] sm:$0xff] }
 0x258   : > { %v1209_v40 = vpop.f32.mrf.mxu1  ;;  %1485 = vmatpush.bf16.msra.mxu1 %v1808_v39 }
 0x259   : > { %v1900_v46 = vpop.eup %1899  ;;  %v1807_v40 = vld [vmem:[%s2441_s14 + $0x8] sm:$0xff] }
 0x25a   : > { %v1902_v9 = vpop.eup %1901 }
 0x25b   : > { %v1226_v43 = vpop.f32.mrf.mxu2  ;;  %v1360_v10 = vmul.f32 32.0, %v1902_v9  ;;  %vm1364_vm4 = vweird.f32 %v1902_v9 }
 0x25c   : > { %v1255_v44 = vmul.f32 %v1898_v42, %v1226_v43  ;;  %1486 = vmatpush.bf16.msra.mxu1 %v1807_v40  ;;  %v1881_v42 = vld [vmem:[%s2440_s13] ss:$0 sm:$0xff] }
 0x25d   : > { %v1361_v11 = vsub.f32 1.0, %v1360_v10 }
 0x25e   : > { %v1259_v45 = vpack.c.bf16 %v1255_v44, %v1255_v44 }
 0x25f   : > { %v1362_v12 = vmul.f32 %v1902_v9, %v1361_v11 }
 0x260   : > { %1748 = vmatmul.msk.bf16.vlgmr.msrb.gmra.mxu2 %vm1044_vm2, %v1259_v45  ;;  %1487 = vmatpush.bf16.msra.mxu1 %v1806_v41 }
 0x261   : > { %v1363_v13 = vadd.f32 %v1902_v9, %v1362_v12  ;;  %v1883_v12 = vld [vmem:[%s2443_s16] ss:$0 sm:$0xff] }
 0x263   : > { %v1228_v47 = vpop.f32.mrf.mxu2  ;;  %v1245_v48 = vpop.f32.mrf.mxu3  ;;  %v2343_v14 = vsel %vm1364_vm4, %v1902_v9, %v1363_v13 }
 0x264   : > { %v1256_v49 = vmul.f32 %v1900_v46, %v1245_v48 }
 0x266   : > { %v1260_v50 = vpack.c.bf16 %v1256_v49, %v1256_v49 }
 0x268   : > { %1749 = vmatmul.msk.bf16.vlgmr.msrb.gmra.mxu3 %vm1044_vm2, %v1260_v50 }
 0x26b   : > { %v1247_v51 = vpop.f32.mrf.mxu3 }
 0x2ca   : > { %v1280_v52 = vpop.f32.mrf.mxu0 }
 0x2cb   : > { %v1341_v58 = vsel %vm649_vm0, %v1280_v52, 0.0 }
 0x2d2   : > { %v1282_v53 = vpop.f32.mrf.mxu0  ;;  %v1299_v54 = vpop.f32.mrf.mxu1 }
 0x2d3   : > { %v1342_v57 = vsel %vm649_vm0, %v1299_v54, 0.0 }
 0x2d4   : > { %v1343_v60 = vadd.f32 %v1342_v57, %v1341_v58 }
 0x2da   : > { %v1301_v55 = vpop.f32.mrf.mxu1 }
 0x2e3   : > { %v1318_v56 = vpop.f32.mrf.mxu2 }
 0x2e4   : > { %v1344_v59 = vsel %vm649_vm0, %v1318_v56, 0.0  ;;  %v1882_v56 = vld [vmem:[%s2442_s15] ss:$0 sm:$0xff] }
 0x2e5   : > { %v1345_v61 = vadd.f32 %v1344_v59, %v1343_v60 }
 0x2eb   : > { %v1320_v62 = vpop.f32.mrf.mxu2  ;;  %v1337_v63 = vpop.f32.mrf.mxu3 }
 0x2ec   : > { %v1346_v1 = vsel %vm649_vm0, %v1337_v63, 0.0 }
 0x2ed   : > { %v1347_v2 = vadd.f32 %v1346_v1, %v1345_v61 }
 0x2ef   : > { %v1352_v4 = vadd.f32 %v1878_v0, %v1347_v2 }
 0x2f1   : > { %v1353_v5 = vadd.f32 %v1352_v4, %v896_v3 }
 0x2f3   : > { %v1339_v6 = vpop.f32.mrf.mxu3  ;;  %v1356_v7 = vsel %vm649_vm0, %v1353_v5, 0.0 }
 0x2f4   : > { %1357 = vadd.xlane.f32.xlu2 %v1356_v7 }
 0x367   : > { %v1358_v15 = vpop.xlane.xlu2 %1357 }
 0x368   : > { %v1366_v16 = vmul.f32 %v2343_v14, %v1358_v15  ;;  %v1884_v15 = vld [vmem:[%s2476_s27] ss:$0 sm:$0xff] }
 0x36a   : > { %v1367_v25 = vsub.f32 %v1353_v5, %v1366_v16 }
 0x36c   : > { %v1368_v17 = vmul.f32 %v1367_v25, %v1367_v25 }
 0x36e   : > { %v1369_v18 = vsel %vm649_vm0, %v1368_v17, 0.0 }
 0x36f   : > { %1370 = vadd.xlane.f32.xlu0 %v1369_v18 }
 0x3e2   : > { %v1371_v21 = vpop.xlane.xlu0 %1370 }
 0x3e3   : > { %v1372_v22 = vmul.f32 %v1371_v21, %v2343_v14 }
 0x3e5   : > { %v1373_v23 = vadd.f32 1e-05, %v1372_v22 }
 0x3e7   : > { %1903 = vrsqrt.f32 %v1373_v23  ;;  %vm1380_vm6 = vweird.f32 %v1373_v23 }
 0x3ed   : > { %v1904_v24 = vpop.eup %1903 }
 0x3ee   : > { %v1375_v26 = vmul.f32 %v1904_v24, %v1373_v23  ;;  %vm1381_vm5 = vweird.f32 %v1904_v24 }
 0x3ef   : > { %vm1382_vm7 = vmor %vm1380_vm6, %vm1381_vm5 }
 0x3f0   : > { %v1376_v27 = vmul.f32 %v1904_v24, %v1375_v26 }
 0x3f2   : > { %v1377_v28 = vmul.f32 0.5, %v1376_v27 }
 0x3f4   : > { %v1378_v29 = vsub.f32 1.5, %v1377_v28 }
 0x3f6   : > { %v1379_v30 = vmul.f32 %v1904_v24, %v1378_v29 }
 0x3f8   : > { %v1383_v32 = vsel %vm1382_vm7, %v1904_v24, %v1379_v30 }
 0x3f9   : > { %v1384_v34 = vmul.f32 %v1383_v32, %v1367_v25 }
 0x3fb   : > { %v1388_v35 = vmul.f32 %v1879_v31, %v1384_v34 }
 0x3fd   : > { %v1392_v36 = vadd.f32 %v1880_v33, %v1388_v35 }
 0x3ff   : > { %v1393_v37 = vpack.c.bf16 %v1392_v36, %v1392_v36 }
 0x401   : > { %1758 = vmatmul.msk.bf16.vlgmr.msra.gmra.mxu0 %vm649_vm0, %v1393_v37 }
 0x47e   : > { %v1426_v43 = vpop.f32.mrf.mxu0 }
 0x47f   : > { %v1427_v44 = vadd.f32 %v1881_v42, %v1426_v43 }
 0x481   : > { %v1431_v45 = vmul.f32 0.044715, %v1427_v44  ;;  %v1430_v52 = vmul.f32 0.5, %v1427_v44 }
 0x483   : > { %v1432_v46 = vmul.f32 %v1431_v45, %v1427_v44 }
 0x485   : > { %v1433_v47 = vmul.f32 %v1432_v46, %v1427_v44 }
 0x486   : > { %v1428_v48 = vpop.f32.mrf.mxu0 }
 0x487   : > { %v1434_v49 = vadd.f32 %v1433_v47, %v1427_v44 }
 0x489   : > { %v1435_v50 = vmul.f32 0.7978846, %v1434_v49 }
 0x48b   : > { %1905 = vtanh.f32 %v1435_v50 }
 0x491   : > { %v1906_v51 = vpop.eup %1905 }
 0x492   : > { %v1437_v53 = vadd.f32 1.0, %v1906_v51 }
 0x494   : > { %v1438_v54 = vmul.f32 %v1437_v53, %v1430_v52 }
 0x496   : > { %v1439_v55 = vpack.c.bf16 %v1438_v54, %v1438_v54 }
 0x498   : > { %1775 = vmatmul.msk.bf16.vlgmr.msra.gmra.mxu1 %vm1476_vm8, %v1439_v55 }
 0x515   : > { %v1489_v57 = vpop.f32.mrf.mxu1 }
 0x516   : > { %v1490_v58 = vadd.f32 %v1882_v56, %v1489_v57 }
 0x518   : > { %v1493_v59 = vadd.f32 %v1490_v58, %v1392_v36 }
 0x51a   : > { %v1496_v60 = vsel %vm649_vm0, %v1493_v59, 0.0 }
 0x51b   : > { %1497 = vadd.xlane.f32.xlu1 %v1496_v60 }
 0x51d   : > { %v1491_v61 = vpop.f32.mrf.mxu1 }
 0x58e   : > { %v1498_v62 = vpop.xlane.xlu1 %1497 }
 0x58f   : > { %v1499_v63 = vmul.f32 %v1498_v62, %v2343_v14 }
 0x591   : > { %v1500_v0 = vsub.f32 %v1493_v59, %v1499_v63 }
 0x593   : > { %v1501_v1 = vmul.f32 %v1500_v0, %v1500_v0 }
 0x595   : > { %v1502_v2 = vsel %vm649_vm0, %v1501_v1, 0.0 }
 0x596   : > { %1503 = vadd.xlane.f32.xlu2 %v1502_v2 }
 0x609   : > { %v1504_v3 = vpop.xlane.xlu2 %1503 }
 0x60a   : > { %v1505_v4 = vmul.f32 %v1504_v3, %v2343_v14 }
 0x60c   : > { %v1506_v5 = vadd.f32 1e-05, %v1505_v4 }
 0x60e   : > { %1907 = vrsqrt.f32 %v1506_v5  ;;  %vm1513_vm10 = vweird.f32 %v1506_v5 }
 0x614   : > { %v1908_v6 = vpop.eup %1907 }
 0x615   : > { %v1508_v7 = vmul.f32 %v1908_v6, %v1506_v5  ;;  %vm1514_vm9 = vweird.f32 %v1908_v6 }
 0x616   : > { %vm1515_vm11 = vmor %vm1513_vm10, %vm1514_vm9 }
 0x617   : > { %v1509_v8 = vmul.f32 %v1908_v6, %v1508_v7 }
 0x619   : > { %v1510_v9 = vmul.f32 0.5, %v1509_v8 }
 0x61b   : > { %v1511_v10 = vsub.f32 1.5, %v1510_v9 }
 0x61d   : > { %v1512_v11 = vmul.f32 %v1908_v6, %v1511_v10 }
 0x61f   : > { %v1516_v13 = vsel %vm1515_vm11, %v1908_v6, %v1512_v11 }
 0x620   : > { %v1517_v14 = vmul.f32 %v1516_v13, %v1500_v0 }
 0x622   : > { %v1521_v16 = vmul.f32 %v1883_v12, %v1517_v14 }
 0x624   : > { %v1525_v25 = vadd.f32 %v1884_v15, %v1521_v16 }
 0x626   : > { %1526 = vst.msk [vmem:[%s591_s24] sm:$0xff] %vm649_vm0, %v1525_v25 }
 0x627   : > { %1936 = shalt.err (!%p1933_p5)
}
 0x628   : > { %1810 = dma.vmem_to_hbm [thread:$0]  (%p2125_p4), %s1542_s30, 128, %s1544_s3, %s1528_s19  }
 0x629 PF: > { %s2477_s21 = sld [smem:[#allocation10_spill]] }
 0x62a   : > { %s2478_s2 = sld [smem:[#allocation7_spill]] }
 0x62f   : > { %p1816_p6 = scmp.ge.s32.totalorder %s2477_s21, 2 }
 0x630   : > { %s1555_s24 = sand.u32 1, %s2478_s2  }
 0x631   : > { %p1813_p7 = pnand %p1816_p6, %p2132_p8  ;;  %s1556_s17 = scalar_lea.sflag [#allocation5], %s1555_s24 }
 0x633   : > { %p1814_p9 = pneg %p1813_p7 }
 0x635   : > { %1962 = dma.done.wait (%p1814_p9), %s1556_s17, 128  }
 0x636   : > { %1964 = vsyncadd (%p1814_p9), %s1556_s17, 4294967168  ;;  %s31_s19 = sadd.s32 1, %s2477_s21   ;;  %s2480_s25 = sld [smem:[#allocation8_spill]] }
 0x637   : > { %p28_p10 = scmp.ge.s32.totalorder %s31_s19, 4   ;;  %s2481_s29 = sld [smem:[#allocation14_spill]] }
 0x638   : > { %s2482_s30 = sld [smem:[#allocation9_spill]]  ;;  %s2484_s27 = smov %s1971_s28 }
 0x639   : > { %s2483_s0 = sld [smem:[#allocation11_spill]]  ;;  %30 = sbr.rel (!%p28_p10) target bundleno = 10 (0xa), region = 135 }
 0x63c   : > { %s2485_s28 = smov %s2480_s25 }
 0x63e   :  { %1562 = vsyncpa [#allocation5], 1 }
 0x63f   :  { %1564 = vsyncpa [#allocation5 + $0x1], 1 }

</bundles_post_ra>
